<compile_context>
chip_gen: v7x
topology: tpu7x:2x2x1
jax: 0.10.0
libtpu: 0.0.40
codegen_flags: <defaults>
</compile_context>

<pallas_src>
import functools

import jax
import jax.numpy as jnp
import numpy as np
from jax import lax
from jax.experimental import pallas as pl
from jax.experimental.pallas import tpu as pltpu

LN_EPS = 1e-5  # torch.nn.functional.layer_norm default


def _round_up(x, m):
    return (x + m - 1) // m * m


# ---------------------------------------------------------------------------
# Fused kernel: all conv+LN+ReLU layers + masked global avg pool + classifier.
# One grid step == one sample.
# ---------------------------------------------------------------------------
def _fused_cnn_kernel(x_ref, w1_ref, b1_ref, wh_ref, bh_ref, masks_ref,
                      clsw_ref, clsb_ref, o_ref, *, K, W, HW, num_hidden,
                      hw_valid):
    def conv_ln_relu(act, w_flat, bias_col, mask, n_hw):
        # act: (C, HW) f32   w_flat: (C_out, K*K*C) bf16   bias_col: (C_out, 1)
        # Build the K*K shifted copies with lane rotations (XLU), stack them
        # along the contraction axis, then do a single deep MXU matmul.
        pieces = []
        for kh in range(K):
            for kw in range(K):
                off = kh * W + kw
                pieces.append(act if off == 0
                              else pltpu.roll(act, shift=HW - off, axis=1))
        patches = jnp.concatenate(pieces, axis=0).astype(jnp.bfloat16)
        acc = jnp.dot(w_flat, patches,
                      preferred_element_type=jnp.float32)      # (C_out, HW)
        acc = acc + bias_col                                    # conv bias

        # LayerNorm over the valid (C_out, H_out, W_out) region, single pass.
        n_valid = float(acc.shape[0] * n_hw)
        masked = acc * mask                                     # zero invalid
        mean = jnp.sum(masked) / n_valid
        var = jnp.sum(masked * acc) / n_valid - mean * mean
        y = (acc - mean) * lax.rsqrt(var + LN_EPS)
        return jnp.maximum(y, 0.0)                              # ReLU

    y = conv_ln_relu(x_ref[0], w1_ref[...], b1_ref[...], masks_ref[0],
                     hw_valid[0])
    for l in range(num_hidden):
        y = conv_ln_relu(y, wh_ref[l], bh_ref[l], masks_ref[l + 1],
                         hw_valid[l + 1])

    # Fused masked global-average-pool + classifier (128-lane padded output).
    scale = masks_ref[num_hidden] * (1.0 / float(hw_valid[-1]))   # (1, HW)
    pooled = jnp.sum(y * scale, axis=1, keepdims=True)            # (C_hid, 1)
    logits = (jnp.sum(pooled * clsw_ref[...], axis=0, keepdims=True)
              + clsb_ref[...])                                    # (1, NC_pad)
    o_ref[0] = logits.astype(o_ref.dtype)


# ---------------------------------------------------------------------------
# Full forward (matches CNNClassifier.forward).  Input is NCHW like PyTorch;
# params use torch layouts: conv w (C_out, C_in, K, K), linear w (NC, C_hid).
# ---------------------------------------------------------------------------
def cnn_classifier_forward(x_nchw, params, *, stride=1, padding=0):
    # TODO(synk): stride != 1 / padding != 0 are not supported by the fused
    # resident-buffer conv (module defaults and test config use 1 / 0).
    assert stride == 1 and padding == 0

    first_w = params["first_w"]                 # (C_hid, C_in, K, K)
    C_hid, C_in, K, _ = first_w.shape
    num_hidden = len(params["hidden_ws"])
    num_classes = params["cls_w"].shape[0]
    N, _, H, W = x_nchw.shape
    HW = H * W
    L = num_hidden + 1

    C_in_pad = _round_up(C_in, 8)               # sublane-aligned channel pad
    NC_pad = _round_up(num_classes, 128)        # lane-dense output store

    # ---- input: NCHW -> (N, C_in_pad, H*W) f32 ----
    x = x_nchw.reshape(N, C_in, HW).astype(jnp.float32)
    if C_in_pad != C_in:
        x = jnp.pad(x, ((0, 0), (0, C_in_pad - C_in), (0, 0)))

    # ---- conv weights: (C_out, C_in, K, K) -> (C_out, K*K*C_pad) bf16 ----
    def flatten_w(w, c_pad):
        c_out, c_in = w.shape[0], w.shape[1]
        if c_pad != c_in:
            w = jnp.pad(w, ((0, 0), (0, c_pad - c_in), (0, 0), (0, 0)))
        return (jnp.transpose(w, (0, 2, 3, 1))
                .reshape(c_out, K * K * c_pad).astype(jnp.bfloat16))

    w1 = flatten_w(first_w, C_in_pad)
    b1 = params["first_b"].reshape(C_hid, 1).astype(jnp.float32)
    if num_hidden > 0:
        wh = jnp.stack([flatten_w(w, C_hid) for w in params["hidden_ws"]])
        bh = jnp.stack([b.reshape(C_hid, 1) for b in params["hidden_bs"]]
                       ).astype(jnp.float32)
    else:  # dummy placeholders, never read inside the kernel
        wh = jnp.zeros((1, C_hid, K * K * C_hid), jnp.bfloat16)
        bh = jnp.zeros((1, C_hid, 1), jnp.float32)

    # ---- per-layer validity masks for the shrinking spatial extent ----
    masks_np = np.zeros((L, 1, HW), np.float32)
    hw_valid = []
    h_cur, w_cur = H, W
    for l in range(L):
        h_cur -= K - 1
        w_cur -= K - 1
        assert h_cur > 0 and w_cur > 0
        m = np.zeros((H, W), np.float32)
        m[:h_cur, :w_cur] = 1.0
        masks_np[l, 0] = m.reshape(HW)
        hw_valid.append(h_cur * w_cur)
    masks = jnp.asarray(masks_np)

    # ---- classifier padded to a lane-dense 128-wide output ----
    cls_w = jnp.zeros((C_hid, NC_pad), jnp.float32
                      ).at[:, :num_classes].set(params["cls_w"].T)
    cls_b = jnp.zeros((1, NC_pad), jnp.float32
                      ).at[0, :num_classes].set(params["cls_b"])

    kernel = functools.partial(_fused_cnn_kernel, K=K, W=W, HW=HW,
                               num_hidden=num_hidden,
                               hw_valid=tuple(hw_valid))

    out = pl.pallas_call(
        kernel,
        out_shape=jax.ShapeDtypeStruct((N, 1, NC_pad), jnp.float32),
        grid_spec=pltpu.PrefetchScalarGridSpec(
            num_scalar_prefetch=0,
            grid=(N,),
            in_specs=[
                pl.BlockSpec((1, C_in_pad, HW), lambda n: (n, 0, 0)),
                pl.BlockSpec(w1.shape, lambda n: (0, 0)),
                pl.BlockSpec(b1.shape, lambda n: (0, 0)),
                pl.BlockSpec(wh.shape, lambda n: (0, 0, 0)),
                pl.BlockSpec(bh.shape, lambda n: (0, 0, 0)),
                pl.BlockSpec(masks.shape, lambda n: (0, 0, 0)),
                pl.BlockSpec(cls_w.shape, lambda n: (0, 0)),
                pl.BlockSpec(cls_b.shape, lambda n: (0, 0)),
            ],
            out_specs=pl.BlockSpec((1, 1, NC_pad), lambda n: (n, 0, 0)),
        ),
        compiler_params=pltpu.CompilerParams(
            dimension_semantics=("parallel",)),
    )(x, w1, b1, wh, bh, masks, cls_w, cls_b)

    # TODO(synk): PyTorch's .squeeze() collapses the batch dim when N == 1;
    # we always return (N, num_classes).
    return out.reshape(N, NC_pad)[:, :num_classes]


# ---------------------------------------------------------------------------
# Pure-JAX reference (all f32) for the correctness check.
# ---------------------------------------------------------------------------
def _reference_forward(x_nchw, params, *, stride=1, padding=0):
    def conv(x, w_torch, b):   # x NHWC, w_torch (C_out, C_in, K, K)
        w = jnp.transpose(w_torch, (2, 3, 1, 0))          # -> HWIO
        y = lax.conv_general_dilated(
            x, w, window_strides=(stride, stride),
            padding=[(padding, padding), (padding, padding)],
            dimension_numbers=("NHWC", "HWIO", "NHWC"))
        return y + b

    def ln_relu(x):            # LayerNorm over all non-batch dims, then ReLU
        ax = (1, 2, 3)
        m = jnp.mean(x, axis=ax, keepdims=True)
        v = jnp.mean((x - m) ** 2, axis=ax, keepdims=True)
        return jnp.maximum((x - m) * lax.rsqrt(v + LN_EPS), 0.0)

    x = jnp.transpose(x_nchw, (0, 2, 3, 1))
    x = ln_relu(conv(x, params["first_w"], params["first_b"]))
    for w, b in zip(params["hidden_ws"], params["hidden_bs"]):
        x = ln_relu(conv(x, w, b))
    pooled = jnp.mean(x, axis=(1, 2))
    return pooled @ params["cls_w"].T + params["cls_b"]


# ---------------------------------------------------------------------------
# Deterministic parameter init (torch-shaped, bounds as in nn.Conv2d/Linear).
# ---------------------------------------------------------------------------
def init_params(key, in_channels, num_classes, kernel_size, num_hidden,
                hidden_channels):
    def conv_init(k, c_in, c_out, ks):
        kw, kb = jax.random.split(k)
        bound = 1.0 / np.sqrt(c_in * ks * ks)
        w = jax.random.uniform(kw, (c_out, c_in, ks, ks), jnp.float32,
                               -bound, bound)
        b = jax.random.uniform(kb, (c_out,), jnp.float32, -bound, bound)
        return w, b

    keys = jax.random.split(key, num_hidden + 2)
    first_w, first_b = conv_init(keys[0], in_channels, hidden_channels,
                                 kernel_size)
    hidden_ws, hidden_bs = [], []
    for i in range(num_hidden):
        w, b = conv_init(keys[1 + i], hidden_channels, hidden_channels,
                         kernel_size)
        hidden_ws.append(w)
        hidden_bs.append(b)
    kw, kb = jax.random.split(keys[-1])
    bound = 1.0 / np.sqrt(hidden_channels)
    cls_w = jax.random.uniform(kw, (num_classes, hidden_channels), jnp.float32,
                               -bound, bound)
    cls_b = jax.random.uniform(kb, (num_classes,), jnp.float32, -bound, bound)
    return dict(first_w=first_w, first_b=first_b,
                hidden_ws=hidden_ws, hidden_bs=hidden_bs,
                cls_w=cls_w, cls_b=cls_b)


if __name__ == "__main__":
    # Config: in_channels=4, num_classes=8, kernel_size=3, num_hidden=2,
    # hidden_channels=32, padding=0, stride=1 (module defaults).
    N, C_IN, H, W = 2, 4, 16, 16
    NUM_CLASSES, KS, NUM_HIDDEN, HID = 8, 3, 2, 32

    key = jax.random.PRNGKey(0)
    k_x, k_p = jax.random.split(key)
    x = jax.random.normal(k_x, (N, C_IN, H, W), jnp.float32)   # NCHW
    params = init_params(k_p, C_IN, NUM_CLASSES, KS, NUM_HIDDEN, HID)

    logits = jax.block_until_ready(cnn_classifier_forward(x, params))
    ref = jax.block_until_ready(_reference_forward(x, params))

    assert logits.shape == (N, NUM_CLASSES)
    # Kernel uses bf16 MXU operands (f32 accumulation) vs an all-f32 reference.
    np.testing.assert_allclose(np.asarray(logits), np.asarray(ref),
                               rtol=1e-2, atol=1e-2)
    print("KERNEL_OK")
</pallas_src>

<mosaic_0001>
module attributes {stable_mosaic.version = 11 : i64} {
  func.func @_fused_cnn_kernel(%arg0: i32, %arg1: memref<1x8x256xf32, #tpu.memory_space<vmem>>, %arg2: memref<32x72xbf16, #tpu.memory_space<vmem>>, %arg3: memref<32x1xf32, #tpu.memory_space<vmem>>, %arg4: memref<2x32x288xbf16, #tpu.memory_space<vmem>>, %arg5: memref<2x32x1xf32, #tpu.memory_space<vmem>>, %arg6: memref<3x1x256xf32, #tpu.memory_space<vmem>>, %arg7: memref<32x128xf32, #tpu.memory_space<vmem>>, %arg8: memref<1x128xf32, #tpu.memory_space<vmem>>, %arg9: memref<1x1x128xf32, #tpu.memory_space<vmem>>) attributes {dimension_semantics = [#tpu.dimension_semantics<parallel>], iteration_bounds = array<i64: 2>, scalar_prefetch = 0 : i64, scratch_operands = 0 : i64, tpu.core_type = #tpu.core_type<tc>, window_params = [{transform_indices = @transform_0, window_bounds = array<i64: 1, 8, 256>}, {pipeline_mode = #tpu.pipeline_mode<synchronous>, transform_indices = @transform_1, window_bounds = array<i64: 32, 72>}, {pipeline_mode = #tpu.pipeline_mode<synchronous>, transform_indices = @transform_2, window_bounds = array<i64: 32, 1>}, {pipeline_mode = #tpu.pipeline_mode<synchronous>, transform_indices = @transform_3, window_bounds = array<i64: 2, 32, 288>}, {pipeline_mode = #tpu.pipeline_mode<synchronous>, transform_indices = @transform_4, window_bounds = array<i64: 2, 32, 1>}, {pipeline_mode = #tpu.pipeline_mode<synchronous>, transform_indices = @transform_5, window_bounds = array<i64: 3, 1, 256>}, {pipeline_mode = #tpu.pipeline_mode<synchronous>, transform_indices = @transform_6, window_bounds = array<i64: 32, 128>}, {pipeline_mode = #tpu.pipeline_mode<synchronous>, transform_indices = @transform_7, window_bounds = array<i64: 1, 128>}, {transform_indices = @transform_8, window_bounds = array<i64: 1, 1, 128>}]} {
    %c0 = arith.constant 0 : index
    %c0_0 = arith.constant 0 : index
    %c0_1 = arith.constant 0 : index
    %0 = vector.load %arg1[%c0, %c0_0, %c0_1] : memref<1x8x256xf32, #tpu.memory_space<vmem>>, vector<1x8x256xf32>
    %1 = vector.shape_cast %0 : vector<1x8x256xf32> to vector<8x256xf32>
    %c0_2 = arith.constant 0 : index
    %c0_3 = arith.constant 0 : index
    %2 = vector.load %arg2[%c0_2, %c0_3] : memref<32x72xbf16, #tpu.memory_space<vmem>>, vector<32x72xbf16>
    %c0_4 = arith.constant 0 : index
    %c0_5 = arith.constant 0 : index
    %3 = vector.load %arg3[%c0_4, %c0_5] : memref<32x1xf32, #tpu.memory_space<vmem>>, vector<32x1xf32>
    %c0_6 = arith.constant 0 : index
    %c0_7 = arith.constant 0 : index
    %c0_8 = arith.constant 0 : index
    %4 = vector.load %arg6[%c0_6, %c0_7, %c0_8] : memref<3x1x256xf32, #tpu.memory_space<vmem>>, vector<1x1x256xf32>
    %5 = vector.shape_cast %4 : vector<1x1x256xf32> to vector<1x256xf32>
    %c255_i32 = arith.constant 255 : i32
    %6 = tpu.dynamic_rotate %1 by %c255_i32 dim 1 : vector<8x256xf32>, i32 -> vector<8x256xf32>
    %c254_i32 = arith.constant 254 : i32
    %7 = tpu.dynamic_rotate %1 by %c254_i32 dim 1 : vector<8x256xf32>, i32 -> vector<8x256xf32>
    %c240_i32 = arith.constant 240 : i32
    %8 = tpu.dynamic_rotate %1 by %c240_i32 dim 1 : vector<8x256xf32>, i32 -> vector<8x256xf32>
    %c239_i32 = arith.constant 239 : i32
    %9 = tpu.dynamic_rotate %1 by %c239_i32 dim 1 : vector<8x256xf32>, i32 -> vector<8x256xf32>
    %c238_i32 = arith.constant 238 : i32
    %10 = tpu.dynamic_rotate %1 by %c238_i32 dim 1 : vector<8x256xf32>, i32 -> vector<8x256xf32>
    %c224_i32 = arith.constant 224 : i32
    %11 = tpu.dynamic_rotate %1 by %c224_i32 dim 1 : vector<8x256xf32>, i32 -> vector<8x256xf32>
    %c223_i32 = arith.constant 223 : i32
    %12 = tpu.dynamic_rotate %1 by %c223_i32 dim 1 : vector<8x256xf32>, i32 -> vector<8x256xf32>
    %c222_i32 = arith.constant 222 : i32
    %13 = tpu.dynamic_rotate %1 by %c222_i32 dim 1 : vector<8x256xf32>, i32 -> vector<8x256xf32>
    %14 = tpu.concatenate %1, %6, %7, %8, %9, %10, %11, %12, %13 in 0 : vector<8x256xf32>, vector<8x256xf32>, vector<8x256xf32>, vector<8x256xf32>, vector<8x256xf32>, vector<8x256xf32>, vector<8x256xf32>, vector<8x256xf32>, vector<8x256xf32> -> vector<72x256xf32>
    %15 = arith.truncf %14 : vector<72x256xf32> to vector<72x256xbf16>
    %cst = arith.constant dense<0.000000e+00> : vector<32x256xf32>
    %16 = tpu.matmul %2, %15, %cst {dimension_numbers = #tpu.dot_dimension_numbers<[1], [0], [0], [1], [0, 0, 1, 1], [], []>} : vector<32x72xbf16>, vector<72x256xbf16>, vector<32x256xf32> -> vector<32x256xf32>
    %17 = vector.broadcast %3 : vector<32x1xf32> to vector<32x256xf32>
    %18 = arith.addf %16, %17 : vector<32x256xf32>
    %19 = vector.broadcast %5 : vector<1x256xf32> to vector<32x256xf32>
    %20 = arith.mulf %18, %19 : vector<32x256xf32>
    %21 = vector.shape_cast %20 : vector<32x256xf32> to vector<1x32x256xf32>
    %cst_9 = arith.constant dense<0.000000e+00> : vector<1xf32>
    %22 = vector.multi_reduction <add>, %21, %cst_9 [1, 2] : vector<1x32x256xf32> to vector<1xf32>
    %23 = vector.shape_cast %22 : vector<1xf32> to vector<1x1x1xf32>
    %24 = vector.extract %23[0, 0, 0] : f32 from vector<1x1x1xf32>
    %cst_10 = arith.constant 6.272000e+03 : f32
    %25 = arith.divf %24, %cst_10 : f32
    %26 = arith.mulf %20, %18 : vector<32x256xf32>
    %27 = vector.shape_cast %26 : vector<32x256xf32> to vector<1x32x256xf32>
    %cst_11 = arith.constant dense<0.000000e+00> : vector<1xf32>
    %28 = vector.multi_reduction <add>, %27, %cst_11 [1, 2] : vector<1x32x256xf32> to vector<1xf32>
    %29 = vector.shape_cast %28 : vector<1xf32> to vector<1x1x1xf32>
    %30 = vector.extract %29[0, 0, 0] : f32 from vector<1x1x1xf32>
    %cst_12 = arith.constant 6.272000e+03 : f32
    %31 = arith.divf %30, %cst_12 : f32
    %32 = arith.mulf %25, %25 : f32
    %33 = arith.subf %31, %32 : f32
    %34 = vector.broadcast %25 : f32 to vector<32x256xf32>
    %35 = arith.subf %18, %34 : vector<32x256xf32>
    %cst_13 = arith.constant 9.99999974E-6 : f32
    %36 = arith.addf %33, %cst_13 : f32
    %37 = math.rsqrt %36 : f32
    %38 = vector.broadcast %37 : f32 to vector<32x256xf32>
    %39 = arith.mulf %35, %38 : vector<32x256xf32>
    %cst_14 = arith.constant 0.000000e+00 : f32
    %40 = vector.broadcast %cst_14 : f32 to vector<32x256xf32>
    %41 = arith.maximumf %39, %40 : vector<32x256xf32>
    %c0_15 = arith.constant 0 : index
    %c0_16 = arith.constant 0 : index
    %c0_17 = arith.constant 0 : index
    %42 = vector.load %arg4[%c0_15, %c0_16, %c0_17] : memref<2x32x288xbf16, #tpu.memory_space<vmem>>, vector<1x32x288xbf16>
    %43 = vector.shape_cast %42 : vector<1x32x288xbf16> to vector<32x288xbf16>
    %c0_18 = arith.constant 0 : index
    %c0_19 = arith.constant 0 : index
    %c0_20 = arith.constant 0 : index
    %44 = vector.load %arg5[%c0_18, %c0_19, %c0_20] : memref<2x32x1xf32, #tpu.memory_space<vmem>>, vector<1x32x1xf32>
    %45 = vector.shape_cast %44 : vector<1x32x1xf32> to vector<32x1xf32>
    %c1 = arith.constant 1 : index
    %c0_21 = arith.constant 0 : index
    %c0_22 = arith.constant 0 : index
    %46 = vector.load %arg6[%c1, %c0_21, %c0_22] : memref<3x1x256xf32, #tpu.memory_space<vmem>>, vector<1x1x256xf32>
    %47 = vector.shape_cast %46 : vector<1x1x256xf32> to vector<1x256xf32>
    %c255_i32_23 = arith.constant 255 : i32
    %48 = tpu.dynamic_rotate %41 by %c255_i32_23 dim 1 : vector<32x256xf32>, i32 -> vector<32x256xf32>
    %c254_i32_24 = arith.constant 254 : i32
    %49 = tpu.dynamic_rotate %41 by %c254_i32_24 dim 1 : vector<32x256xf32>, i32 -> vector<32x256xf32>
    %c240_i32_25 = arith.constant 240 : i32
    %50 = tpu.dynamic_rotate %41 by %c240_i32_25 dim 1 : vector<32x256xf32>, i32 -> vector<32x256xf32>
    %c239_i32_26 = arith.constant 239 : i32
    %51 = tpu.dynamic_rotate %41 by %c239_i32_26 dim 1 : vector<32x256xf32>, i32 -> vector<32x256xf32>
    %c238_i32_27 = arith.constant 238 : i32
    %52 = tpu.dynamic_rotate %41 by %c238_i32_27 dim 1 : vector<32x256xf32>, i32 -> vector<32x256xf32>
    %c224_i32_28 = arith.constant 224 : i32
    %53 = tpu.dynamic_rotate %41 by %c224_i32_28 dim 1 : vector<32x256xf32>, i32 -> vector<32x256xf32>
    %c223_i32_29 = arith.constant 223 : i32
    %54 = tpu.dynamic_rotate %41 by %c223_i32_29 dim 1 : vector<32x256xf32>, i32 -> vector<32x256xf32>
    %c222_i32_30 = arith.constant 222 : i32
    %55 = tpu.dynamic_rotate %41 by %c222_i32_30 dim 1 : vector<32x256xf32>, i32 -> vector<32x256xf32>
    %56 = tpu.concatenate %41, %48, %49, %50, %51, %52, %53, %54, %55 in 0 : vector<32x256xf32>, vector<32x256xf32>, vector<32x256xf32>, vector<32x256xf32>, vector<32x256xf32>, vector<32x256xf32>, vector<32x256xf32>, vector<32x256xf32>, vector<32x256xf32> -> vector<288x256xf32>
    %57 = arith.truncf %56 : vector<288x256xf32> to vector<288x256xbf16>
    %cst_31 = arith.constant dense<0.000000e+00> : vector<32x256xf32>
    %58 = tpu.matmul %43, %57, %cst_31 {dimension_numbers = #tpu.dot_dimension_numbers<[1], [0], [0], [1], [0, 0, 1, 1], [], []>} : vector<32x288xbf16>, vector<288x256xbf16>, vector<32x256xf32> -> vector<32x256xf32>
    %59 = vector.broadcast %45 : vector<32x1xf32> to vector<32x256xf32>
    %60 = arith.addf %58, %59 : vector<32x256xf32>
    %61 = vector.broadcast %47 : vector<1x256xf32> to vector<32x256xf32>
    %62 = arith.mulf %60, %61 : vector<32x256xf32>
    %63 = vector.shape_cast %62 : vector<32x256xf32> to vector<1x32x256xf32>
    %cst_32 = arith.constant dense<0.000000e+00> : vector<1xf32>
    %64 = vector.multi_reduction <add>, %63, %cst_32 [1, 2] : vector<1x32x256xf32> to vector<1xf32>
    %65 = vector.shape_cast %64 : vector<1xf32> to vector<1x1x1xf32>
    %66 = vector.extract %65[0, 0, 0] : f32 from vector<1x1x1xf32>
    %cst_33 = arith.constant 4.608000e+03 : f32
    %67 = arith.divf %66, %cst_33 : f32
    %68 = arith.mulf %62, %60 : vector<32x256xf32>
    %69 = vector.shape_cast %68 : vector<32x256xf32> to vector<1x32x256xf32>
    %cst_34 = arith.constant dense<0.000000e+00> : vector<1xf32>
    %70 = vector.multi_reduction <add>, %69, %cst_34 [1, 2] : vector<1x32x256xf32> to vector<1xf32>
    %71 = vector.shape_cast %70 : vector<1xf32> to vector<1x1x1xf32>
    %72 = vector.extract %71[0, 0, 0] : f32 from vector<1x1x1xf32>
    %cst_35 = arith.constant 4.608000e+03 : f32
    %73 = arith.divf %72, %cst_35 : f32
    %74 = arith.mulf %67, %67 : f32
    %75 = arith.subf %73, %74 : f32
    %76 = vector.broadcast %67 : f32 to vector<32x256xf32>
    %77 = arith.subf %60, %76 : vector<32x256xf32>
    %cst_36 = arith.constant 9.99999974E-6 : f32
    %78 = arith.addf %75, %cst_36 : f32
    %79 = math.rsqrt %78 : f32
    %80 = vector.broadcast %79 : f32 to vector<32x256xf32>
    %81 = arith.mulf %77, %80 : vector<32x256xf32>
    %cst_37 = arith.constant 0.000000e+00 : f32
    %82 = vector.broadcast %cst_37 : f32 to vector<32x256xf32>
    %83 = arith.maximumf %81, %82 : vector<32x256xf32>
    %c1_38 = arith.constant 1 : index
    %c0_39 = arith.constant 0 : index
    %c0_40 = arith.constant 0 : index
    %84 = vector.load %arg4[%c1_38, %c0_39, %c0_40] : memref<2x32x288xbf16, #tpu.memory_space<vmem>>, vector<1x32x288xbf16>
    %85 = vector.shape_cast %84 : vector<1x32x288xbf16> to vector<32x288xbf16>
    %c1_41 = arith.constant 1 : index
    %c0_42 = arith.constant 0 : index
    %c0_43 = arith.constant 0 : index
    %86 = vector.load %arg5[%c1_41, %c0_42, %c0_43] : memref<2x32x1xf32, #tpu.memory_space<vmem>>, vector<1x32x1xf32>
    %87 = vector.shape_cast %86 : vector<1x32x1xf32> to vector<32x1xf32>
    %c2 = arith.constant 2 : index
    %c0_44 = arith.constant 0 : index
    %c0_45 = arith.constant 0 : index
    %88 = vector.load %arg6[%c2, %c0_44, %c0_45] : memref<3x1x256xf32, #tpu.memory_space<vmem>>, vector<1x1x256xf32>
    %89 = vector.shape_cast %88 : vector<1x1x256xf32> to vector<1x256xf32>
    %c255_i32_46 = arith.constant 255 : i32
    %90 = tpu.dynamic_rotate %83 by %c255_i32_46 dim 1 : vector<32x256xf32>, i32 -> vector<32x256xf32>
    %c254_i32_47 = arith.constant 254 : i32
    %91 = tpu.dynamic_rotate %83 by %c254_i32_47 dim 1 : vector<32x256xf32>, i32 -> vector<32x256xf32>
    %c240_i32_48 = arith.constant 240 : i32
    %92 = tpu.dynamic_rotate %83 by %c240_i32_48 dim 1 : vector<32x256xf32>, i32 -> vector<32x256xf32>
    %c239_i32_49 = arith.constant 239 : i32
    %93 = tpu.dynamic_rotate %83 by %c239_i32_49 dim 1 : vector<32x256xf32>, i32 -> vector<32x256xf32>
    %c238_i32_50 = arith.constant 238 : i32
    %94 = tpu.dynamic_rotate %83 by %c238_i32_50 dim 1 : vector<32x256xf32>, i32 -> vector<32x256xf32>
    %c224_i32_51 = arith.constant 224 : i32
    %95 = tpu.dynamic_rotate %83 by %c224_i32_51 dim 1 : vector<32x256xf32>, i32 -> vector<32x256xf32>
    %c223_i32_52 = arith.constant 223 : i32
    %96 = tpu.dynamic_rotate %83 by %c223_i32_52 dim 1 : vector<32x256xf32>, i32 -> vector<32x256xf32>
    %c222_i32_53 = arith.constant 222 : i32
    %97 = tpu.dynamic_rotate %83 by %c222_i32_53 dim 1 : vector<32x256xf32>, i32 -> vector<32x256xf32>
    %98 = tpu.concatenate %83, %90, %91, %92, %93, %94, %95, %96, %97 in 0 : vector<32x256xf32>, vector<32x256xf32>, vector<32x256xf32>, vector<32x256xf32>, vector<32x256xf32>, vector<32x256xf32>, vector<32x256xf32>, vector<32x256xf32>, vector<32x256xf32> -> vector<288x256xf32>
    %99 = arith.truncf %98 : vector<288x256xf32> to vector<288x256xbf16>
    %cst_54 = arith.constant dense<0.000000e+00> : vector<32x256xf32>
    %100 = tpu.matmul %85, %99, %cst_54 {dimension_numbers = #tpu.dot_dimension_numbers<[1], [0], [0], [1], [0, 0, 1, 1], [], []>} : vector<32x288xbf16>, vector<288x256xbf16>, vector<32x256xf32> -> vector<32x256xf32>
    %101 = vector.broadcast %87 : vector<32x1xf32> to vector<32x256xf32>
    %102 = arith.addf %100, %101 : vector<32x256xf32>
    %103 = vector.broadcast %89 : vector<1x256xf32> to vector<32x256xf32>
    %104 = arith.mulf %102, %103 : vector<32x256xf32>
    %105 = vector.shape_cast %104 : vector<32x256xf32> to vector<1x32x256xf32>
    %cst_55 = arith.constant dense<0.000000e+00> : vector<1xf32>
    %106 = vector.multi_reduction <add>, %105, %cst_55 [1, 2] : vector<1x32x256xf32> to vector<1xf32>
    %107 = vector.shape_cast %106 : vector<1xf32> to vector<1x1x1xf32>
    %108 = vector.extract %107[0, 0, 0] : f32 from vector<1x1x1xf32>
    %cst_56 = arith.constant 3.200000e+03 : f32
    %109 = arith.divf %108, %cst_56 : f32
    %110 = arith.mulf %104, %102 : vector<32x256xf32>
    %111 = vector.shape_cast %110 : vector<32x256xf32> to vector<1x32x256xf32>
    %cst_57 = arith.constant dense<0.000000e+00> : vector<1xf32>
    %112 = vector.multi_reduction <add>, %111, %cst_57 [1, 2] : vector<1x32x256xf32> to vector<1xf32>
    %113 = vector.shape_cast %112 : vector<1xf32> to vector<1x1x1xf32>
    %114 = vector.extract %113[0, 0, 0] : f32 from vector<1x1x1xf32>
    %cst_58 = arith.constant 3.200000e+03 : f32
    %115 = arith.divf %114, %cst_58 : f32
    %116 = arith.mulf %109, %109 : f32
    %117 = arith.subf %115, %116 : f32
    %118 = vector.broadcast %109 : f32 to vector<32x256xf32>
    %119 = arith.subf %102, %118 : vector<32x256xf32>
    %cst_59 = arith.constant 9.99999974E-6 : f32
    %120 = arith.addf %117, %cst_59 : f32
    %121 = math.rsqrt %120 : f32
    %122 = vector.broadcast %121 : f32 to vector<32x256xf32>
    %123 = arith.mulf %119, %122 : vector<32x256xf32>
    %cst_60 = arith.constant 0.000000e+00 : f32
    %124 = vector.broadcast %cst_60 : f32 to vector<32x256xf32>
    %125 = arith.maximumf %123, %124 : vector<32x256xf32>
    %c2_61 = arith.constant 2 : index
    %c0_62 = arith.constant 0 : index
    %c0_63 = arith.constant 0 : index
    %126 = vector.load %arg6[%c2_61, %c0_62, %c0_63] : memref<3x1x256xf32, #tpu.memory_space<vmem>>, vector<1x1x256xf32>
    %127 = vector.shape_cast %126 : vector<1x1x256xf32> to vector<1x256xf32>
    %cst_64 = arith.constant 0.00999999977 : f32
    %128 = vector.broadcast %cst_64 : f32 to vector<1x256xf32>
    %129 = arith.mulf %127, %128 : vector<1x256xf32>
    %130 = vector.broadcast %129 : vector<1x256xf32> to vector<32x256xf32>
    %131 = arith.mulf %125, %130 : vector<32x256xf32>
    %cst_65 = arith.constant dense<0.000000e+00> : vector<32xf32>
    %132 = vector.multi_reduction <add>, %131, %cst_65 [1] : vector<32x256xf32> to vector<32xf32>
    %133 = vector.shape_cast %132 : vector<32xf32> to vector<32x1xf32>
    %c0_66 = arith.constant 0 : index
    %c0_67 = arith.constant 0 : index
    %134 = vector.load %arg7[%c0_66, %c0_67] : memref<32x128xf32, #tpu.memory_space<vmem>>, vector<32x128xf32>
    %135 = vector.broadcast %133 : vector<32x1xf32> to vector<32x128xf32>
    %136 = arith.mulf %135, %134 : vector<32x128xf32>
    %cst_68 = arith.constant dense<0.000000e+00> : vector<128xf32>
    %137 = vector.multi_reduction <add>, %136, %cst_68 [0] : vector<32x128xf32> to vector<128xf32>
    %138 = vector.shape_cast %137 : vector<128xf32> to vector<1x128xf32>
    %c0_69 = arith.constant 0 : index
    %c0_70 = arith.constant 0 : index
    %139 = vector.load %arg8[%c0_69, %c0_70] : memref<1x128xf32, #tpu.memory_space<vmem>>, vector<1x128xf32>
    %140 = arith.addf %138, %139 : vector<1x128xf32>
    %c0_71 = arith.constant 0 : index
    %c0_72 = arith.constant 0 : index
    %c0_73 = arith.constant 0 : index
    %141 = vector.load %arg9[%c0_71, %c0_72, %c0_73] : memref<1x1x128xf32, #tpu.memory_space<vmem>>, vector<1x1x128xf32>
    %142 = vector.shape_cast %141 : vector<1x1x128xf32> to vector<1x128xf32>
    %143 = vector.shape_cast %140 : vector<1x128xf32> to vector<1x1x128xf32>
    tpu.vector_store %arg9[%c0_71, %c0_72, %c0_73], %143 {strides = array<i32>} : memref<1x1x128xf32, #tpu.memory_space<vmem>>, vector<1x1x128xf32>,
    return
  }
  func.func @transform_0(%arg0: i32) -> (i32, i32, i32) {
    %c0_i32 = arith.constant 0 : i32
    %c0_i32_0 = arith.constant 0 : i32
    %c0_i32_1 = arith.constant 0 : i32
    return %arg0, %c0_i32, %c0_i32_0 : i32, i32, i32
  }
  func.func @transform_1(%arg0: i32) -> (i32, i32) {
    %c0_i32 = arith.constant 0 : i32
    %c0_i32_0 = arith.constant 0 : i32
    %c0_i32_1 = arith.constant 0 : i32
    return %c0_i32, %c0_i32_0 : i32, i32
  }
  func.func @transform_2(%arg0: i32) -> (i32, i32) {
    %c0_i32 = arith.constant 0 : i32
    %c0_i32_0 = arith.constant 0 : i32
    %c0_i32_1 = arith.constant 0 : i32
    return %c0_i32, %c0_i32_0 : i32, i32
  }
  func.func @transform_3(%arg0: i32) -> (i32, i32, i32) {
    %c0_i32 = arith.constant 0 : i32
    %c0_i32_0 = arith.constant 0 : i32
    %c0_i32_1 = arith.constant 0 : i32
    %c0_i32_2 = arith.constant 0 : i32
    return %c0_i32, %c0_i32_0, %c0_i32_1 : i32, i32, i32
  }
  func.func @transform_4(%arg0: i32) -> (i32, i32, i32) {
    %c0_i32 = arith.constant 0 : i32
    %c0_i32_0 = arith.constant 0 : i32
    %c0_i32_1 = arith.constant 0 : i32
    %c0_i32_2 = arith.constant 0 : i32
    return %c0_i32, %c0_i32_0, %c0_i32_1 : i32, i32, i32
  }
  func.func @transform_5(%arg0: i32) -> (i32, i32, i32) {
    %c0_i32 = arith.constant 0 : i32
    %c0_i32_0 = arith.constant 0 : i32
    %c0_i32_1 = arith.constant 0 : i32
    %c0_i32_2 = arith.constant 0 : i32
    return %c0_i32, %c0_i32_0, %c0_i32_1 : i32, i32, i32
  }
  func.func @transform_6(%arg0: i32) -> (i32, i32) {
    %c0_i32 = arith.constant 0 : i32
    %c0_i32_0 = arith.constant 0 : i32
    %c0_i32_1 = arith.constant 0 : i32
    return %c0_i32, %c0_i32_0 : i32, i32
  }
  func.func @transform_7(%arg0: i32) -> (i32, i32) {
    %c0_i32 = arith.constant 0 : i32
    %c0_i32_0 = arith.constant 0 : i32
    %c0_i32_1 = arith.constant 0 : i32
    return %c0_i32, %c0_i32_0 : i32, i32
  }
  func.func @transform_8(%arg0: i32) -> (i32, i32, i32) {
    %c0_i32 = arith.constant 0 : i32
    %c0_i32_0 = arith.constant 0 : i32
    %c0_i32_1 = arith.constant 0 : i32
    return %arg0, %c0_i32, %c0_i32_0 : i32, i32, i32
  }
}

</mosaic_0001>

<bundles_post_ra>
// kernel: tpu_custom_call.1
= control target key start
LH: loop header
LB: loop body
LE: loop exit
PB: predicated region body
PF: predicated region fallthrough
CT: control target
= control target key end

     0   :  { %s3405_s0 = inlined_call_operand.hbm [shape: f32[2,8,256], index: 0, kind: input, shape index: {}]   ;;  %s3406_s1 = inlined_call_operand.hbm [shape: bf16[32,72], index: 1, kind: input, shape index: {}]   ;;  %s3407_s2 = inlined_call_operand.vmem [shape: f32[32,1], index: 2, kind: input, shape index: {}]   ;;  %s3408_s3 = inlined_call_operand.vmem [shape: bf16[2,32,288], index: 3, kind: input, shape index: {}]   ;;  %s3409_s4 = inlined_call_operand.vmem [shape: f32[2,32,1], index: 4, kind: input, shape index: {}]   ;;  %s3410_s5 = inlined_call_operand.vmem [shape: f32[3,1,256], index: 5, kind: input, shape index: {}]   ;;  %s3411_s6 = inlined_call_operand.hbm [shape: f32[32,128], index: 6, kind: input, shape index: {}]   ;;  %s3412_s7 = inlined_call_operand.vmem [shape: f32[1,128], index: 7, kind: input, shape index: {}]   ;;  %s3413_s8 = inlined_call_operand.hbm [shape: f32[2,1,128], index: 8, kind: output, shape index: {}]  }
   0x1   :  { %3431 = sst [smem:[#allocation12_spill]] %s3405_s0 }
   0x2   :  { %13 = vsyncpa [#allocation3], 0 }
   0x3   :  { %15 = vsyncpa [#allocation3 + $0x1], 0 }
   0x4   :  { %16 = vsyncpa [#allocation6], 0 }
   0x5   :  { %17 = vsyncpa [#allocation4], 0 }
   0x6   :  { %19 = vsyncpa [#allocation4 + $0x1], 0  ;;  %s2570_s27 = smov 0   ;;  %s2572_s28 = smov 0  }
   0x7   :  { %s2574_s29 = smov 0   ;;  %s2576_s30 = smov 0  }
   0x8 LB: > { %s2591_s9 = sadd.s32 4294967295, %s2506_s30   ;;  %s1779_s10 = sadd.s32 4294967294, %s2506_s30   ;;  %s2506_s30 = sphi %s2576_s30, %s3456_s30   ;;  %s2502_s29 = sphi %s2574_s29, %s3455_s29   ;;  %s2498_s28 = sphi %s2572_s28, %s3454_s28   ;;  %s2494_s27 = sphi %s2570_s27, %s3453_s27  }
   0x9   : > { %p45_p0 = scmp.ne.s32.totalorder %s2498_s28, %s2494_s27  ;;  %p3414_p1 = scmp.eq.s32.totalorder %s2591_s9, 0 }
   0xa   : > { %p222_p3 = scmp.eq.s32.totalorder %s1779_s10, 1  ;;  %p1780_p5 = scmp.ge.s32.totalorder %s2506_s30, 1 }
   0xb   : > { %p2600_p4 = por %p3414_p1, %p45_p0  ;;  %p229_p7 = scmp.lt.s32.totalorder %s2506_s30, 3 }
   0xc   : > { %p2605_p6 = por %p222_p3, %p45_p0  ;;  %s2508_s14 = smov [#allocation5]  }
   0xd   : > { %s3432_s11 = scalar_select %p2600_p4, 1, 0 }
   0xe   : > { %s3433_s12 = scalar_select %p2605_p6, 1, 0 }
   0xf   : > { %p2610_p8 = pnand %p1780_p5, %p229_p7  ;;  %s241_s15 = sshll.u32 %s2508_s14, 4  ;;  %s2614_s15 = int_to_ptr.vmem [resolvable:$true] %s241_s15 }
  0x10   : > { %s2509_s17 = smov [#allocation7]   ;;  %s2350_s21 = scalar_lea.hbm %s3406_s1, 256 }
  0x11   : > { %p1896_p9 = pneg %p2610_p8  ;;  %s266_s18 = sshll.u32 %s2509_s17, 4  ;;  %s2625_s18 = int_to_ptr.vmem [resolvable:$true] %s266_s18 }
  0x12   : > { %p2351_p12 = scmp.ne.s32.totalorder %s3406_s1, %s2350_s21  ;;  %p2357_p5 = scmp.lt.u32.totalorder %s2350_s21, %s3406_s1 }
  0x13   : > { %p2621_p11 = pnand %p1896_p9, %p3414_p1 }
  0x15   : > { %p2352_p13 = pneg %p2621_p11 }
  0x17   : > { %p2353_p0 = pnand %p2352_p13, %p2351_p12 }
  0x19   : > { %p2354_p3 = pneg %p2353_p0 }
  0x1b   : > { %p2359_p7 = pnand %p2357_p5, %p2354_p3 }
  0x1d   : > { %2362 = shalt.err (!%p2359_p7)
}
  0x1e   : > { %s2363_s26 = scalar_lea.vmem %s2614_s15, 256  ;;  %p2371_p2 = scmp.lt.s32.totalorder %s2614_s15, %s2614_s15 }
  0x1f   : > { %p2364_p9 = scmp.ne.s32.totalorder %s2614_s15, %s2363_s26  ;;  %p2372_p12 = scmp.lt.s32.totalorder %s2363_s26, %s2363_s26 }
  0x21   : > { %p2366_p10 = pnand %p2364_p9, %p2352_p13  ;;  %p2373_p0 = por %p2372_p12, %p2371_p2 }
  0x23   : > { %p2367_p1 = pneg %p2366_p10 }
  0x25   : > { %p2374_p6 = pnand %p2373_p0, %p2367_p1 }
  0x27   : > { %2377 = shalt.err (!%p2374_p6)
}
  0x28   : > { %s2510_s10 = smov 64   ;;  %s2511_s14 = smov 4  }
  0x29   : > { %1899 = dma.hbm_to_vmem [thread:$0]  (!%p2621_p11), %s3406_s1, 256, %s2614_s15, [#allocation6], %s2510_s10, %s2510_s10, %s2511_s14  }
  0x2a   : > { %s2378_s22 = scalar_lea.hbm %s3411_s6, 512 }
  0x2b   : > { %p2379_p2 = scmp.ne.s32.totalorder %s3411_s6, %s2378_s22  ;;  %p2385_p10 = scmp.lt.u32.totalorder %s2378_s22, %s3411_s6 }
  0x2d   : > { %p2381_p1 = pnand %p2379_p2, %p2352_p13 }
  0x2f   : > { %p2382_p6 = pneg %p2381_p1 }
  0x31   : > { %p2387_p3 = pnand %p2385_p10, %p2382_p6 }
  0x33   : > { %2390 = shalt.err (!%p2387_p3)
}
  0x34   : > { %s2391_s15 = scalar_lea.vmem %s2625_s18, 512  ;;  %p2399_p12 = scmp.lt.s32.totalorder %s2625_s18, %s2625_s18 }
  0x35   : > { %p2392_p5 = scmp.ne.s32.totalorder %s2625_s18, %s2391_s15  ;;  %p2400_p0 = scmp.lt.s32.totalorder %s2391_s15, %s2391_s15 }
  0x37   : > { %p2394_p7 = pnand %p2392_p5, %p2352_p13  ;;  %p2401_p2 = por %p2400_p0, %p2399_p12 }
  0x39   : > { %p2395_p9 = pneg %p2394_p7 }
  0x3b   : > { %p2402_p1 = pnand %p2401_p2, %p2395_p9 }
  0x3d   : > { %2405 = shalt.err (!%p2402_p1)
}
  0x3e   : > { %s2512_s10 = smov 128   ;;  %s2513_s14 = smov 8  }
  0x3f   : > { %1902 = dma.hbm_to_vmem [thread:$0]  (!%p2621_p11), %s3411_s6, 512, %s2625_s18, [#allocation6], %s2512_s10, %s2512_s10, %s2513_s14  }
  0x40   : > { %s2680_s20 = sadd.s32 1, %s2506_s30   ;;  %s32_s22 = sadd.s32 1, %s2502_s29 }
  0x41   : > { %s29_s21 = ssub.s32 %s2506_s30, %s2680_s20  ;;  %p39_p6 = scmp.ne.s32.totalorder %s2502_s29, %s2498_s28 }
  0x42   : > { %p30_p13 = scmp.eq.s32.totalorder %s29_s21, 0  ;;  %p40_p10 = scmp.eq.s32.totalorder %s2506_s30, 0 }
  0x43   : > { %p3436_p5 = scmp.eq.s32.totalorder %s2591_s9, 1  ;;  %p1913_p9 = scmp.lt.s32.totalorder %s2506_s30, 2 }
  0x44   : > { %s2689_s23 = scalar_select %p30_p13, %s2502_s29, %s32_s22  }
  0x45   : > { %p41_p3 = por %p40_p10, %p39_p6  ;;  %p2693_p7 = por %p3436_p5, %p39_p6 }
  0x46   : > { %s283_s16 = sand.u32 1, %s2502_s29   ;;  %s1829_s18 = sshll.u32 %s2506_s30, 8 }
  0x47   : > { %s3437_s24 = scalar_select %p2693_p7, 1, 0 }
  0x48   : > { %s1784_s25 = sshll.u32 %s283_s16, 4  ;;  %s3438_s0 = sld [smem:[#allocation12_spill]] }
  0x49   : > { %s287_s14 = scalar_lea.vmem [#allocation2], %s1784_s25  ;;  %p2707_p11 = pnand %p1913_p9, %p41_p3 }
  0x4a   : > { %s295_s17 = sshll.u32 %s287_s14, 4  ;;  %s284_s21 = scalar_lea.sflag [#allocation3], %s283_s16  ;;  %s2705_s17 = int_to_ptr.vmem [resolvable:$true] %s295_s17 }
  0x4b   : > { %p2408_p0 = pneg %p2707_p11 }
  0x4e   : > { %s2703_s10 = scalar_lea.hbm %s3438_s0, %s1829_s18  ;;  %s2411_s26 = scalar_lea.hbm %s3438_s0, 512 }
  0x4f   : > { %s2406_s22 = scalar_lea.hbm %s2703_s10, 256  ;;  %p2412_p13 = scmp.lt.u32.totalorder %s2703_s10, %s3438_s0 }
  0x50   : > { %p2407_p12 = scmp.ne.s32.totalorder %s2703_s10, %s2406_s22  ;;  %p2413_p6 = scmp.lt.u32.totalorder %s2411_s26, %s2406_s22 }
  0x51   : > { %p2415_p3 = scmp.lt.u32.totalorder %s2406_s22, %s2703_s10 }
  0x52   : > { %p2409_p2 = pnand %p2408_p0, %p2407_p12  ;;  %p2414_p10 = por %p2413_p6, %p2412_p13 }
  0x54   : > { %p2410_p1 = pneg %p2409_p2  ;;  %p2416_p5 = por %p2415_p3, %p2414_p10 }
  0x56   : > { %p2417_p9 = pnand %p2416_p5, %p2410_p1 }
  0x58   : > { %2420 = shalt.err (!%p2417_p9)
}
  0x59   : > { %s2421_s16 = scalar_lea.vmem %s2705_s17, 256  ;;  %s2514_s18 = smov [#allocation2]  }
  0x5a   : > { %p2422_p12 = scmp.ne.s32.totalorder %s2705_s17, %s2421_s16  ;;  %s2426_s25 = sshll.u32 %s2514_s18, 4  ;;  %s2427_s25 = int_to_ptr.vmem [resolvable:$false] %s2426_s25 }
  0x5b   : > { %s2428_s15 = scalar_lea.vmem %s2427_s25, 512  ;;  %p2429_p4 = scmp.lt.s32.totalorder %s2705_s17, %s2427_s25 }
  0x5c   : > { %p2424_p2 = pnand %p2422_p12, %p2408_p0  ;;  %p2430_p13 = scmp.lt.s32.totalorder %s2428_s15, %s2421_s16 }
  0x5e   : > { %p2425_p7 = pneg %p2424_p2  ;;  %p2431_p6 = por %p2430_p13, %p2429_p4 }
  0x60   : > { %p2432_p10 = pnand %p2431_p6, %p2425_p7 }
  0x62   : > { %2435 = shalt.err (!%p2432_p10)
}
  0x63   : > { %1906 = dma.hbm_to_vmem [thread:$0]  (!%p2707_p11), %s2703_s10, 256, %s2705_s17, %s284_s21  }
  0x64   : > { %304 = sbr.rel (%p2610_p8) target bundleno = 2363 (0x93b), region = 52  ;;  %s2739_s22 = sand.u32 (!%p2610_p8), 1, %s2498_s28  }
  0x65   : > { %s1788_s26 = sshll.u32 (!%p2610_p8), %s2739_s22, 4  ;;  %s307_s14 = scalar_lea.sflag (!%p2610_p8), [#allocation3], %s2739_s22 }
  0x66   : > { %s310_s16 = scalar_lea.vmem (!%p2610_p8), [#allocation2], %s1788_s26  ;;  %p3440_p4 = scmp.ne.s32.totalorder (!%p2610_p8), %s3432_s11, 0 }
  0x6b   : > { %2481 = dma.done.wait (%p3440_p4), %s307_s14, 256  }
  0x6c   : > { %2483 = vsyncadd (%p3440_p4), %s307_s14, 4294967040  ;;  %p3441_p7 = scmp.eq.s32.totalorder %s2591_s9, 0 }
  0x6e   : > { %2485 = dma.done.wait (%p3441_p7), [#allocation6], 768   ;;  %p3442_p11 = pmov %p3441_p7 }
  0x6f   : > { %v351_v0 = vld [vmem:[%s310_s16] sm:$0xff]  ;;  %v352_v1 = vld [vmem:[%s310_s16 + $0x8] sm:$0xff]  ;;  %s3429_s13 = smov 127   ;;  %s3423_s10 = smov 112   ;;  %v2521_v3 = vmov 0   ;;  %v366_v8 = vlaneseq  ;;  %vm467_vm8 = vcmask 1043456  }
  0x70   : > { %2487 = vsyncadd (%p3442_p11), [#allocation6], 4294966528  ;;  %v1964_v2 = vpack.i.bf16 %v352_v1, %v351_v0  ;;  %s3425_s17 = smov 126   ;;  %s3421_s11 = smov 111   ;;  %506 = vmatprep.mubr.bf16.mxu0 %v2521_v3  ;;  %2004 = vset.pattern.permute.xlu0 %v2521_v3  ;;  %v357_v4 = vld [vmem:[%s3407_s2] sm:$0xff]  ;;  %v358_v5 = vld [vmem:[%s3407_s2 + $0x8] sm:$0xff] }
  0x71   : > { %s3419_s19 = smov 110   ;;  %s3417_s21 = smov 96   ;;  %2005 = vset.pattern.permute.xlu1 %v2521_v3  ;;  %v360_v6 = vld [vmem:[%s3407_s2 + $0x18] sm:$0xff]  ;;  %v359_v7 = vld [vmem:[%s3407_s2 + $0x10] sm:$0xff]  ;;  %v2775_v9 = vand.u32 127, %v366_v8  ;;  %v2326_v61 = vld [vmem:[#allocation5] sm:$0xff]  }
  0x72   : > { %1965 = vrot.lane.b32.xlu0 %v1964_v2, %s3429_s13  ;;  %1975 = vrot.lane.b32.xlu1 %v1964_v2, %s3423_s10  ;;  %s3427_s18 = smov 95   ;;  %s2523_s25 = smov 94   ;;  %vm460_vm9 = vcmask 588800   ;;  %v2327_v62 = vld [vmem:[#allocation5 + $0x8] sm:$0xff]   ;;  %v529_v63 = vshrl.u32 %v366_v8, 7  ;;  %vm916_vm10 = vcmask 261120  }
  0x73   : > { %vm368_vm0 = vcmp.lt.s32.totalorder %v2775_v9, 127  ;;  %vm382_vm1 = vcmp.lt.s32.totalorder %v2775_v9, 112  ;;  %vm375_vm2 = vcmp.lt.s32.totalorder %v2775_v9, 126  ;;  %vm389_vm3 = vcmp.lt.s32.totalorder %v2775_v9, 111  ;;  %p3450_p0 = scmp.ne.s32.totalorder %s3437_s24, 0 }
  0x74   : > { %vm396_vm4 = vcmp.lt.s32.totalorder %v2775_v9, 110  ;;  %vm403_vm5 = vcmp.lt.s32.totalorder %v2775_v9, 96  ;;  %vm417_vm6 = vcmp.lt.s32.totalorder %v2775_v9, 94  ;;  %vm410_vm7 = vcmp.lt.s32.totalorder %v2775_v9, 95  ;;  %v2343_v9 = vld [vmem:[%s3408_s3 + $0x38] ss:$12 sps:$4 sm:$0xff]  }
  0x76   : > { %1970 = vrot.lane.b32.xlu0 %v1964_v2, %s3425_s17  ;;  %1980 = vrot.lane.b32.xlu1 %v1964_v2, %s3421_s11 }
  0x7a   : > { %1985 = vrot.lane.b32.xlu0 %v1964_v2, %s3419_s19  ;;  %1990 = vrot.lane.b32.xlu1 %v1964_v2, %s3417_s21 }
  0x7e   : > { %1995 = vrot.lane.b32.xlu0 %v1964_v2, %s3427_s18  ;;  %2000 = vrot.lane.b32.xlu1 %v1964_v2, %s2523_s25  ;;  %v2824_v2 = vsub.s32 1, %v529_v63 }
  0x82   : > { %432 = vperm.xlu0 %2004, %v357_v4   ;;  %437 = vperm.xlu1 %2005, %v358_v5  }
  0x86   : > { %447 = vperm.xlu0 %2004, %v360_v6   ;;  %442 = vperm.xlu1 %2005, %v359_v7  }
  0xe4   : > { %v1966_v10 = vpop.permute.xlu0 %1965  ;;  %v1976_v11 = vpop.permute.xlu1 %1975 }
  0xe5   : > { %v1968_v12 = vunpack.i.h.bf16 %v1966_v10  ;;  %v1967_v13 = vunpack.i.l.bf16 %v1966_v10  ;;  %v1978_v14 = vunpack.i.h.bf16 %v1976_v11  ;;  %v1977_v15 = vunpack.i.l.bf16 %v1976_v11 }
  0xe7   : > { %v370_v16 = vsel %vm368_vm0, %v1968_v12, %v1967_v13  ;;  %v369_v17 = vsel %vm368_vm0, %v1967_v13, %v1968_v12  ;;  %v384_v22 = vsel %vm382_vm1, %v1978_v14, %v1977_v15  ;;  %v383_v23 = vsel %vm382_vm1, %v1977_v15, %v1978_v14 }
  0xe8   : > { %v1971_v18 = vpop.permute.xlu0 %1970  ;;  %v421_v19 = vpack.c.bf16 %v370_v16, %v352_v1  ;;  %v420_v20 = vpack.c.bf16 %v369_v17, %v351_v0  ;;  %v1981_v21 = vpop.permute.xlu1 %1980  ;;  %v2819_v0 = vsub.s32 0, %v529_v63  ;;  %v361_v1 = vld [vmem:[%s3410_s5] sm:$0x3] }
  0xe9   : > { %v1973_v24 = vunpack.i.h.bf16 %v1971_v18  ;;  %v1972_v25 = vunpack.i.l.bf16 %v1971_v18  ;;  %v1983_v26 = vunpack.i.h.bf16 %v1981_v21  ;;  %v1982_v27 = vunpack.i.l.bf16 %v1981_v21 }
  0xea   : > { %474 = vmatprep.subr.bf16.mxu0 %v421_v19  ;;  %v531_v4 = vrot.slane %v361_v1, %v2819_v0  ;;  %v535_v7 = vrot.slane %v361_v1, %v2824_v2 }
  0xeb   : > { %475 = vmatpush1.bf16.msra.mxu0 %v420_v20  ;;  %v377_v28 = vsel %vm375_vm2, %v1973_v24, %v1972_v25  ;;  %v376_v29 = vsel %vm375_vm2, %v1972_v25, %v1973_v24  ;;  %v391_v34 = vsel %vm389_vm3, %v1983_v26, %v1982_v27  ;;  %v390_v35 = vsel %vm389_vm3, %v1982_v27, %v1983_v26 }
  0xec   : > { %v1986_v30 = vpop.permute.xlu0 %1985  ;;  %v423_v31 = vpack.c.bf16 %v384_v22, %v377_v28  ;;  %v422_v32 = vpack.c.bf16 %v383_v23, %v376_v29  ;;  %v1991_v33 = vpop.permute.xlu1 %1990 }
  0xed   : > { %v1988_v36 = vunpack.i.h.bf16 %v1986_v30  ;;  %v1987_v37 = vunpack.i.l.bf16 %v1986_v30  ;;  %v1993_v38 = vunpack.i.h.bf16 %v1991_v33  ;;  %v1992_v39 = vunpack.i.l.bf16 %v1991_v33 }
  0xee   : > { %476 = vmatprep.subr.bf16.mxu0 %v423_v31 }
  0xef   : > { %477 = vmatpush1.bf16.msra.mxu0 %v422_v32  ;;  %v398_v40 = vsel %vm396_vm4, %v1988_v36, %v1987_v37  ;;  %v397_v41 = vsel %vm396_vm4, %v1987_v37, %v1988_v36  ;;  %v405_v46 = vsel %vm403_vm5, %v1993_v38, %v1992_v39  ;;  %v404_v47 = vsel %vm403_vm5, %v1992_v39, %v1993_v38 }
  0xf0   : > { %v1996_v42 = vpop.permute.xlu0 %1995  ;;  %v425_v43 = vpack.c.bf16 %v398_v40, %v391_v34  ;;  %v424_v44 = vpack.c.bf16 %v397_v41, %v390_v35  ;;  %v2001_v45 = vpop.permute.xlu1 %2000 }
  0xf1   : > { %v1998_v48 = vunpack.i.h.bf16 %v1996_v42  ;;  %v1997_v49 = vunpack.i.l.bf16 %v1996_v42  ;;  %v2003_v50 = vunpack.i.h.bf16 %v2001_v45  ;;  %v2002_v51 = vunpack.i.l.bf16 %v2001_v45 }
  0xf2   : > { %478 = vmatprep.subr.bf16.mxu0 %v425_v43 }
  0xf3   : > { %479 = vmatpush1.bf16.msra.mxu0 %v424_v44  ;;  %v419_v52 = vsel %vm417_vm6, %v2003_v50, %v2002_v51  ;;  %v412_v53 = vsel %vm410_vm7, %v1998_v48, %v1997_v49  ;;  %v411_v54 = vsel %vm410_vm7, %v1997_v49, %v1998_v48  ;;  %v418_v55 = vsel %vm417_vm6, %v2002_v51, %v2003_v50 }
  0xf4   : > { %v429_v56 = vpack.c.bf16 %v419_v52, %v419_v52  ;;  %v427_v57 = vpack.c.bf16 %v412_v53, %v405_v46  ;;  %v426_v58 = vpack.c.bf16 %v411_v54, %v404_v47  ;;  %v428_v59 = vpack.c.bf16 %v418_v55, %v418_v55 }
  0xf6   : > { %480 = vmatprep.subr.bf16.mxu0 %v427_v57  ;;  %v469_v60 = vsel %vm467_vm8, %v428_v59, 0 }
  0xf7   : > { %481 = vmatpush1.bf16.msra.mxu0 %v426_v58 }
  0xf8   : > { %1793 = vmatprep.subr.msk.bf16.mxu0 %vm467_vm8, %v429_v56 }
  0xfb   : > { %483 = vmatpush1.bf16.msra.mxu0 %v469_v60 }
  0xfe   : > { %1794 = vmatmul.mubr.msk.bf16.vlgmr.msra.gmra.mrb[0].mxu0 %vm460_vm9, %v2326_v61 }
  0xff   : > { %516 = vmatprep.mubr.bf16.mxu0 %v2521_v3 }
 0x101   : > { %v433_v5 = vpop.permute.xlu0 %432  ;;  %v438_v12 = vpop.permute.xlu1 %437 }
 0x105   : > { %v443_v27 = vpop.permute.xlu1 %442  ;;  %v448_v31 = vpop.permute.xlu0 %447 }
 0x106   : > { %1795 = vmatmul.mubr.msk.bf16.gmra.mrb[4].mxu0 %vm460_vm9, %v2327_v62 }
 0x1d1   : > { %v508_v6 = vpop.f32.mrb[0].mxu0 }
 0x1d2   : > { %v2828_v10 = vadd.f32 %v508_v6, %v433_v5  ;;  %v510_v11 = vpop.f32.mrb[1].mxu0 }
 0x1d3   : > { %v2830_v13 = vadd.f32 %v510_v11, %v433_v5  ;;  %v512_v8 = vpop.f32.mrb[2].mxu0 }
 0x1d4   : > { %v538_v14 = vmul.f32 %v531_v4, %v2828_v10  ;;  %v2833_v15 = vadd.f32 %v512_v8, %v438_v12  ;;  %v514_v16 = vpop.f32.mrb[3].mxu0 }
 0x1d5   : > { %v539_v17 = vmul.f32 %v535_v7, %v2830_v13  ;;  %v2836_v18 = vadd.f32 %v514_v16, %v438_v12 }
 0x1d6   : > { %v565_v19 = vmul.f32 %v538_v14, %v2828_v10  ;;  %v540_v20 = vmul.f32 %v531_v4, %v2833_v15 }
 0x1d7   : > { %v546_v21 = vadd.f32 %v539_v17, %v538_v14  ;;  %v566_v22 = vmul.f32 %v539_v17, %v2830_v13  ;;  %v541_v23 = vmul.f32 %v535_v7, %v2836_v18 }
 0x1d8   : > { %v567_v24 = vmul.f32 %v540_v20, %v2833_v15 }
 0x1d9   : > { %v573_v25 = vadd.f32 %v566_v22, %v565_v19  ;;  %v547_v26 = vadd.f32 %v546_v21, %v540_v20  ;;  %v518_v28 = vpop.f32.mrb[4].mxu0  ;;  %v568_v34 = vmul.f32 %v541_v23, %v2836_v18 }
 0x1da   : > { %v2843_v29 = vadd.f32 %v518_v28, %v443_v27  ;;  %v520_v30 = vpop.f32.mrb[5].mxu0 }
 0x1db   : > { %v574_v32 = vadd.f32 %v573_v25, %v567_v24  ;;  %v548_v33 = vadd.f32 %v547_v26, %v541_v23  ;;  %v2846_v35 = vadd.f32 %v520_v30, %v443_v27  ;;  %v522_v36 = vpop.f32.mrb[6].mxu0 }
 0x1dc   : > { %v542_v37 = vmul.f32 %v531_v4, %v2843_v29  ;;  %v2849_v38 = vadd.f32 %v522_v36, %v448_v31  ;;  %v524_v39 = vpop.f32.mrb[7].mxu0 }
 0x1dd   : > { %v575_v40 = vadd.f32 %v574_v32, %v568_v34  ;;  %v543_v41 = vmul.f32 %v535_v7, %v2846_v35  ;;  %v2852_v42 = vadd.f32 %v524_v39, %v448_v31 }
 0x1de   : > { %v549_v43 = vadd.f32 %v548_v33, %v542_v37  ;;  %v569_v44 = vmul.f32 %v542_v37, %v2843_v29  ;;  %v544_v45 = vmul.f32 %v531_v4, %v2849_v38 }
 0x1df   : > { %v570_v46 = vmul.f32 %v543_v41, %v2846_v35  ;;  %v545_v48 = vmul.f32 %v535_v7, %v2852_v42 }
 0x1e0   : > { %v576_v47 = vadd.f32 %v575_v40, %v569_v44  ;;  %v550_v49 = vadd.f32 %v549_v43, %v543_v41  ;;  %v571_v50 = vmul.f32 %v544_v45, %v2849_v38 }
 0x1e1   : > { %v572_v54 = vmul.f32 %v545_v48, %v2852_v42 }
 0x1e2   : > { %v551_v51 = vadd.f32 %v550_v49, %v544_v45  ;;  %v577_v52 = vadd.f32 %v576_v47, %v570_v46  ;;  %v2330_v47 = vld [vmem:[%s3408_s3 + $0x4] ss:$12 sps:$4 sm:$0xff]   ;;  %v633_v49 = vld [vmem:[%s3409_s4 + $0x8] sm:$0xff] }
 0x1e3   : > { %955 = vmatprep.mubr.bf16.mxu1 %v2330_v47 }
 0x1e4   : > { %v552_v53 = vadd.f32 %v551_v51, %v545_v48  ;;  %v578_v55 = vadd.f32 %v577_v52, %v571_v50  ;;  %v632_v48 = vld [vmem:[%s3409_s4] sm:$0xff]  ;;  %v634_v50 = vld [vmem:[%s3409_s4 + $0x10] sm:$0xff]  ;;  %v635_v51 = vld [vmem:[%s3409_s4 + $0x18] sm:$0xff] }
 0x1e6   : > { %553 = vadd.xlane.f32.xlu1 %v552_v53  ;;  %v579_v56 = vadd.f32 %v578_v55, %v572_v54 }
 0x1e8   : > { %580 = vadd.xlane.f32.xlu0 %v579_v56 }
 0x273   : > { %v554_v57 = vpop.xlane.xlu1 %553 }
 0x274   : > { %v555_v58 = vrot.slane %v554_v57, 4 }
 0x275   : > { %v581_v59 = vpop.xlane.xlu0 %580 }
 0x276   : > { %v556_v60 = vadd.f32 %v555_v58, %v554_v57  ;;  %v582_v61 = vrot.slane %v581_v59, 4 }
 0x278   : > { %v557_v62 = vrot.slane %v556_v60, 2  ;;  %v583_v63 = vadd.f32 %v582_v61, %v581_v59 }
 0x27a   : > { %v584_v1 = vrot.slane %v583_v63, 2  ;;  %v558_v4 = vadd.f32 %v557_v62, %v556_v60 }
 0x27c   : > { %v559_v5 = vrot.slane %v558_v4, 1  ;;  %v585_v6 = vadd.f32 %v584_v1, %v583_v63 }
 0x27e   : > { %v560_v7 = vadd.f32 %v559_v5, %v558_v4  ;;  %v586_v11 = vrot.slane %v585_v6, 1 }
 0x280   : > { %1866 = vpush %v560_v7  ;;  %v587_v12 = vadd.f32 %v586_v11, %v585_v6 }
 0x282   : > { %1868 = vpush %v587_v12 }
 0x2b1   : > { %s1867_s19 = spop %1866 }
 0x2b2   : > { %s564_s21 = smul.f32 0.00015943877, %s1867_s19  ;;  %s3443_s19 = smov 112  }
 0x2b3   : > { %s1869_s15 = spop %1868 }
 0x2b4   : > { %s592_s26 = smul.f32 %s564_s21, %s564_s21  ;;  %v594_v16 = vstv %s564_s21  ;;  %s3444_s21 = smov 111  }
 0x2b5   : > { %s591_s14 = smul.f32 0.00015943877, %s1869_s15  ;;  %v595_v17 = vsub.f32 %v2828_v10, %v594_v16  ;;  %v596_v19 = vsub.f32 %v2830_v13, %v594_v16  ;;  %v597_v20 = vsub.f32 %v2833_v15, %v594_v16  ;;  %v598_v21 = vsub.f32 %v2836_v18, %v594_v16  ;;  %s3445_s15 = smov 110  }
 0x2b6   : > { %v599_v22 = vsub.f32 %v2843_v29, %v594_v16  ;;  %v600_v23 = vsub.f32 %v2846_v35, %v594_v16  ;;  %v601_v24 = vsub.f32 %v2849_v38, %v594_v16  ;;  %v602_v25 = vsub.f32 %v2852_v42, %v594_v16 }
 0x2b7   : > { %s593_s16 = ssub.f32 %s591_s14, %s592_s26  ;;  %s3446_s26 = smov 96  }
 0x2b9   : > { %s603_s10 = sadd.f32 1e-05, %s593_s16 }
 0x2bb   : > { %v604_v8 = vstv %s603_s10 }
 0x2bc   : > { %2344 = vrsqrt.f32 %v604_v8 }
 0x2c6   : > { %v2345_v14 = vpop.eup %2344 }
 0x2c7   : > { %1870 = vpush %v2345_v14 }
 0x2f8   : > { %s1871_s11 = spop %1870 }
 0x2f9   : > { %v607_v26 = vstv %s1871_s11 }
 0x2fa   : > { %v608_v27 = vmul.f32 %v607_v26, %v595_v17  ;;  %v609_v28 = vmul.f32 %v607_v26, %v596_v19  ;;  %v610_v30 = vmul.f32 %v607_v26, %v597_v20  ;;  %v611_v10 = vmul.f32 %v607_v26, %v598_v21 }
 0x2fb   : > { %v612_v31 = vmul.f32 %v607_v26, %v599_v22  ;;  %v613_v13 = vmul.f32 %v607_v26, %v600_v23  ;;  %v614_v32 = vmul.f32 %v607_v26, %v601_v24  ;;  %v615_v15 = vmul.f32 %v607_v26, %v602_v25 }
 0x2fc   : > { %v616_v33 = vmax.f32 %v608_v27, 0.0  ;;  %v617_v18 = vmax.f32 %v609_v28, 0.0  ;;  %v618_v34 = vmax.f32 %v610_v30, 0.0  ;;  %v619_v29 = vmax.f32 %v611_v10, 0.0 }
 0x2fd   : > { %v620_v36 = vmax.f32 %v612_v31, 0.0  ;;  %v621_v37 = vmax.f32 %v613_v13, 0.0  ;;  %v622_v35 = vmax.f32 %v614_v32, 0.0  ;;  %v623_v39 = vmax.f32 %v615_v15, 0.0 }
 0x2fe   : > { %v2011_v38 = vpack.i.bf16 %v619_v29, %v617_v18  ;;  %v831_v40 = vpack.c.bf16 %v619_v29, %v617_v18  ;;  %v2006_v41 = vpack.i.bf16 %v618_v34, %v616_v33  ;;  %v830_v42 = vpack.c.bf16 %v618_v34, %v616_v33 }
 0x2ff   : > { %v833_v43 = vpack.c.bf16 %v623_v39, %v621_v37  ;;  %v2016_v44 = vpack.i.bf16 %v622_v35, %v620_v36  ;;  %v2021_v45 = vpack.i.bf16 %v623_v39, %v621_v37  ;;  %v832_v46 = vpack.c.bf16 %v622_v35, %v620_v36 }
 0x300   : > { %2012 = vrot.lane.b32.xlu1 %v2011_v38, %s3429_s13  ;;  %923 = vmatprep.subr.bf16.mxu1 %v831_v40 }
 0x301   : > { %2007 = vrot.lane.b32.xlu0 %v2006_v41, %s3429_s13  ;;  %924 = vmatpush1.bf16.msra.mxu1 %v830_v42 }
 0x302   : > { %925 = vmatprep.subr.bf16.mxu1 %v833_v43 }
 0x304   : > { %2017 = vrot.lane.b32.xlu1 %v2016_v44, %s3429_s13 }
 0x305   : > { %2022 = vrot.lane.b32.xlu0 %v2021_v45, %s3429_s13  ;;  %926 = vmatpush1.bf16.msra.mxu1 %v832_v46 }
 0x308   : > { %2027 = vrot.lane.b32.xlu1 %v2006_v41, %s3425_s17 }
 0x309   : > { %2032 = vrot.lane.b32.xlu0 %v2011_v38, %s3425_s17 }
 0x30c   : > { %2037 = vrot.lane.b32.xlu1 %v2016_v44, %s3425_s17 }
 0x30d   : > { %2042 = vrot.lane.b32.xlu0 %v2021_v45, %s3425_s17 }
 0x310   : > { %2047 = vrot.lane.b32.xlu1 %v2006_v41, %s3443_s19 }
 0x311   : > { %2052 = vrot.lane.b32.xlu0 %v2011_v38, %s3443_s19 }
 0x314   : > { %2057 = vrot.lane.b32.xlu1 %v2016_v44, %s3443_s19 }
 0x315   : > { %2062 = vrot.lane.b32.xlu0 %v2021_v45, %s3443_s19 }
 0x318   : > { %2067 = vrot.lane.b32.xlu1 %v2006_v41, %s3444_s21 }
 0x319   : > { %2072 = vrot.lane.b32.xlu0 %v2011_v38, %s3444_s21 }
 0x31c   : > { %2077 = vrot.lane.b32.xlu1 %v2016_v44, %s3444_s21 }
 0x31d   : > { %2082 = vrot.lane.b32.xlu0 %v2021_v45, %s3444_s21 }
 0x320   : > { %2087 = vrot.lane.b32.xlu1 %v2006_v41, %s3445_s15 }
 0x321   : > { %2092 = vrot.lane.b32.xlu0 %v2011_v38, %s3445_s15 }
 0x324   : > { %2097 = vrot.lane.b32.xlu1 %v2016_v44, %s3445_s15 }
 0x325   : > { %2102 = vrot.lane.b32.xlu0 %v2021_v45, %s3445_s15 }
 0x328   : > { %2107 = vrot.lane.b32.xlu1 %v2006_v41, %s3446_s26 }
 0x329   : > { %2112 = vrot.lane.b32.xlu0 %v2011_v38, %s3446_s26 }
 0x32c   : > { %2117 = vrot.lane.b32.xlu1 %v2016_v44, %s3446_s26 }
 0x32d   : > { %2122 = vrot.lane.b32.xlu0 %v2021_v45, %s3446_s26 }
 0x330   : > { %2127 = vrot.lane.b32.xlu1 %v2006_v41, %s3427_s18 }
 0x331   : > { %2132 = vrot.lane.b32.xlu0 %v2011_v38, %s3427_s18 }
 0x334   : > { %2137 = vrot.lane.b32.xlu1 %v2016_v44, %s3427_s18 }
 0x335   : > { %2142 = vrot.lane.b32.xlu0 %v2021_v45, %s3427_s18 }
 0x338   : > { %2147 = vrot.lane.b32.xlu1 %v2006_v41, %s2523_s25 }
 0x339   : > { %2152 = vrot.lane.b32.xlu0 %v2011_v38, %s2523_s25 }
 0x33c   : > { %2157 = vrot.lane.b32.xlu1 %v2016_v44, %s2523_s25 }
 0x33d   : > { %2162 = vrot.lane.b32.xlu0 %v2021_v45, %s2523_s25 }
 0x340   : > { %868 = vperm.xlu1 %2005, %v632_v48  }
 0x341   : > { %873 = vperm.xlu0 %2004, %v633_v49  }
 0x344   : > { %878 = vperm.xlu1 %2005, %v634_v50  }
 0x345   : > { %883 = vperm.xlu0 %2004, %v635_v51  }
 0x372   : > { %v2013_v52 = vpop.permute.xlu1 %2012 }
 0x373   : > { %v2015_v53 = vunpack.i.h.bf16 %v2013_v52  ;;  %v2014_v54 = vunpack.i.l.bf16 %v2013_v52  ;;  %v2008_v55 = vpop.permute.xlu0 %2007 }
 0x374   : > { %v2010_v56 = vunpack.i.h.bf16 %v2008_v55  ;;  %v2009_v57 = vunpack.i.l.bf16 %v2008_v55 }
 0x376   : > { %v2018_v58 = vpop.permute.xlu1 %2017  ;;  %v658_v59 = vsel %vm368_vm0, %v2014_v54, %v2009_v57  ;;  %v659_v60 = vsel %vm368_vm0, %v2015_v53, %v2010_v56  ;;  %v654_v61 = vsel %vm368_vm0, %v2009_v57, %v2014_v54  ;;  %v655_v62 = vsel %vm368_vm0, %v2010_v56, %v2015_v53 }
 0x377   : > { %v2020_v63 = vunpack.i.h.bf16 %v2018_v58  ;;  %v2019_v1 = vunpack.i.l.bf16 %v2018_v58  ;;  %v2023_v4 = vpop.permute.xlu0 %2022  ;;  %v835_v5 = vpack.c.bf16 %v659_v60, %v658_v59  ;;  %v834_v6 = vpack.c.bf16 %v655_v62, %v654_v61 }
 0x378   : > { %v2025_v7 = vunpack.i.h.bf16 %v2023_v4  ;;  %v2024_v11 = vunpack.i.l.bf16 %v2023_v4 }
 0x379   : > { %927 = vmatprep.subr.bf16.mxu1 %v835_v5 }
 0x37a   : > { %928 = vmatpush1.bf16.msra.mxu1 %v834_v6  ;;  %v2028_v12 = vpop.permute.xlu1 %2027  ;;  %v660_v8 = vsel %vm368_vm0, %v2024_v11, %v2019_v1  ;;  %v661_v14 = vsel %vm368_vm0, %v2025_v7, %v2020_v63  ;;  %v656_v16 = vsel %vm368_vm0, %v2019_v1, %v2024_v11  ;;  %v657_v17 = vsel %vm368_vm0, %v2020_v63, %v2025_v7 }
 0x37b   : > { %v2030_v19 = vunpack.i.h.bf16 %v2028_v12  ;;  %v2029_v20 = vunpack.i.l.bf16 %v2028_v12  ;;  %v2033_v21 = vpop.permute.xlu0 %2032  ;;  %v837_v22 = vpack.c.bf16 %v661_v14, %v660_v8  ;;  %v836_v23 = vpack.c.bf16 %v657_v17, %v656_v16 }
 0x37c   : > { %v2035_v24 = vunpack.i.h.bf16 %v2033_v21  ;;  %v2034_v25 = vunpack.i.l.bf16 %v2033_v21 }
 0x37d   : > { %929 = vmatprep.subr.bf16.mxu1 %v837_v22 }
 0x37e   : > { %930 = vmatpush1.bf16.msra.mxu1 %v836_v23  ;;  %v2038_v26 = vpop.permute.xlu1 %2037  ;;  %v682_v27 = vsel %vm375_vm2, %v2034_v25, %v2029_v20  ;;  %v683_v28 = vsel %vm375_vm2, %v2035_v24, %v2030_v19  ;;  %v678_v30 = vsel %vm375_vm2, %v2029_v20, %v2034_v25  ;;  %v679_v10 = vsel %vm375_vm2, %v2030_v19, %v2035_v24 }
 0x37f   : > { %v2040_v31 = vunpack.i.h.bf16 %v2038_v26  ;;  %v2039_v13 = vunpack.i.l.bf16 %v2038_v26  ;;  %v2043_v32 = vpop.permute.xlu0 %2042  ;;  %v839_v15 = vpack.c.bf16 %v683_v28, %v682_v27  ;;  %v838_v33 = vpack.c.bf16 %v679_v10, %v678_v30 }
 0x380   : > { %v2045_v18 = vunpack.i.h.bf16 %v2043_v32  ;;  %v2044_v34 = vunpack.i.l.bf16 %v2043_v32 }
 0x381   : > { %931 = vmatprep.subr.bf16.mxu1 %v839_v15 }
 0x382   : > { %932 = vmatpush1.bf16.msra.mxu1 %v838_v33  ;;  %v2048_v29 = vpop.permute.xlu1 %2047  ;;  %v684_v36 = vsel %vm375_vm2, %v2044_v34, %v2039_v13  ;;  %v685_v37 = vsel %vm375_vm2, %v2045_v18, %v2040_v31  ;;  %v680_v35 = vsel %vm375_vm2, %v2039_v13, %v2044_v34  ;;  %v681_v39 = vsel %vm375_vm2, %v2040_v31, %v2045_v18 }
 0x383   : > { %v2050_v38 = vunpack.i.h.bf16 %v2048_v29  ;;  %v2049_v40 = vunpack.i.l.bf16 %v2048_v29  ;;  %v2053_v41 = vpop.permute.xlu0 %2052  ;;  %v841_v42 = vpack.c.bf16 %v685_v37, %v684_v36  ;;  %v840_v43 = vpack.c.bf16 %v681_v39, %v680_v35 }
 0x384   : > { %v2055_v44 = vunpack.i.h.bf16 %v2053_v41  ;;  %v2054_v45 = vunpack.i.l.bf16 %v2053_v41 }
 0x385   : > { %933 = vmatprep.subr.bf16.mxu1 %v841_v42 }
 0x386   : > { %934 = vmatpush1.bf16.msra.mxu1 %v840_v43  ;;  %v2058_v46 = vpop.permute.xlu1 %2057  ;;  %v706_v47 = vsel %vm382_vm1, %v2054_v45, %v2049_v40  ;;  %v707_v48 = vsel %vm382_vm1, %v2055_v44, %v2050_v38  ;;  %v702_v49 = vsel %vm382_vm1, %v2049_v40, %v2054_v45  ;;  %v703_v50 = vsel %vm382_vm1, %v2050_v38, %v2055_v44 }
 0x387   : > { %v2060_v51 = vunpack.i.h.bf16 %v2058_v46  ;;  %v2059_v52 = vunpack.i.l.bf16 %v2058_v46  ;;  %v2063_v53 = vpop.permute.xlu0 %2062  ;;  %v843_v54 = vpack.c.bf16 %v707_v48, %v706_v47  ;;  %v842_v55 = vpack.c.bf16 %v703_v50, %v702_v49 }
 0x388   : > { %v2065_v56 = vunpack.i.h.bf16 %v2063_v53  ;;  %v2064_v57 = vunpack.i.l.bf16 %v2063_v53 }
 0x389   : > { %935 = vmatprep.subr.bf16.mxu1 %v843_v54 }
 0x38a   : > { %936 = vmatpush1.bf16.msra.mxu1 %v842_v55  ;;  %v2068_v58 = vpop.permute.xlu1 %2067  ;;  %v708_v59 = vsel %vm382_vm1, %v2064_v57, %v2059_v52  ;;  %v709_v60 = vsel %vm382_vm1, %v2065_v56, %v2060_v51  ;;  %v704_v61 = vsel %vm382_vm1, %v2059_v52, %v2064_v57  ;;  %v705_v62 = vsel %vm382_vm1, %v2060_v51, %v2065_v56 }
 0x38b   : > { %v2070_v63 = vunpack.i.h.bf16 %v2068_v58  ;;  %v2069_v1 = vunpack.i.l.bf16 %v2068_v58  ;;  %v2073_v4 = vpop.permute.xlu0 %2072  ;;  %v845_v5 = vpack.c.bf16 %v709_v60, %v708_v59  ;;  %v844_v6 = vpack.c.bf16 %v705_v62, %v704_v61 }
 0x38c   : > { %v2075_v7 = vunpack.i.h.bf16 %v2073_v4  ;;  %v2074_v11 = vunpack.i.l.bf16 %v2073_v4 }
 0x38d   : > { %937 = vmatprep.subr.bf16.mxu1 %v845_v5 }
 0x38e   : > { %938 = vmatpush1.bf16.msra.mxu1 %v844_v6  ;;  %v2078_v12 = vpop.permute.xlu1 %2077  ;;  %v730_v8 = vsel %vm389_vm3, %v2074_v11, %v2069_v1  ;;  %v731_v14 = vsel %vm389_vm3, %v2075_v7, %v2070_v63  ;;  %v726_v16 = vsel %vm389_vm3, %v2069_v1, %v2074_v11  ;;  %v727_v17 = vsel %vm389_vm3, %v2070_v63, %v2075_v7 }
 0x38f   : > { %v2080_v19 = vunpack.i.h.bf16 %v2078_v12  ;;  %v2079_v20 = vunpack.i.l.bf16 %v2078_v12  ;;  %v2083_v21 = vpop.permute.xlu0 %2082  ;;  %v847_v22 = vpack.c.bf16 %v731_v14, %v730_v8  ;;  %v846_v23 = vpack.c.bf16 %v727_v17, %v726_v16 }
 0x390   : > { %v2085_v24 = vunpack.i.h.bf16 %v2083_v21  ;;  %v2084_v25 = vunpack.i.l.bf16 %v2083_v21 }
 0x391   : > { %939 = vmatprep.subr.bf16.mxu1 %v847_v22 }
 0x392   : > { %940 = vmatpush1.bf16.msra.mxu1 %v846_v23  ;;  %v2088_v26 = vpop.permute.xlu1 %2087  ;;  %v732_v27 = vsel %vm389_vm3, %v2084_v25, %v2079_v20  ;;  %v733_v28 = vsel %vm389_vm3, %v2085_v24, %v2080_v19  ;;  %v728_v30 = vsel %vm389_vm3, %v2079_v20, %v2084_v25  ;;  %v729_v10 = vsel %vm389_vm3, %v2080_v19, %v2085_v24 }
 0x393   : > { %v2090_v31 = vunpack.i.h.bf16 %v2088_v26  ;;  %v2089_v13 = vunpack.i.l.bf16 %v2088_v26  ;;  %v2093_v32 = vpop.permute.xlu0 %2092  ;;  %v849_v15 = vpack.c.bf16 %v733_v28, %v732_v27  ;;  %v848_v33 = vpack.c.bf16 %v729_v10, %v728_v30 }
 0x394   : > { %v2095_v18 = vunpack.i.h.bf16 %v2093_v32  ;;  %v2094_v34 = vunpack.i.l.bf16 %v2093_v32 }
 0x395   : > { %941 = vmatprep.subr.bf16.mxu1 %v849_v15 }
 0x396   : > { %942 = vmatpush1.bf16.msra.mxu1 %v848_v33  ;;  %v2098_v29 = vpop.permute.xlu1 %2097  ;;  %v754_v36 = vsel %vm396_vm4, %v2094_v34, %v2089_v13  ;;  %v755_v37 = vsel %vm396_vm4, %v2095_v18, %v2090_v31  ;;  %v750_v35 = vsel %vm396_vm4, %v2089_v13, %v2094_v34  ;;  %v751_v39 = vsel %vm396_vm4, %v2090_v31, %v2095_v18 }
 0x397   : > { %v2100_v38 = vunpack.i.h.bf16 %v2098_v29  ;;  %v2099_v40 = vunpack.i.l.bf16 %v2098_v29  ;;  %v2103_v41 = vpop.permute.xlu0 %2102  ;;  %v851_v42 = vpack.c.bf16 %v755_v37, %v754_v36  ;;  %v850_v43 = vpack.c.bf16 %v751_v39, %v750_v35 }
 0x398   : > { %v2105_v44 = vunpack.i.h.bf16 %v2103_v41  ;;  %v2104_v45 = vunpack.i.l.bf16 %v2103_v41 }
 0x399   : > { %943 = vmatprep.subr.bf16.mxu1 %v851_v42 }
 0x39a   : > { %944 = vmatpush1.bf16.msra.mxu1 %v850_v43  ;;  %v2108_v46 = vpop.permute.xlu1 %2107  ;;  %v756_v47 = vsel %vm396_vm4, %v2104_v45, %v2099_v40  ;;  %v757_v48 = vsel %vm396_vm4, %v2105_v44, %v2100_v38  ;;  %v752_v49 = vsel %vm396_vm4, %v2099_v40, %v2104_v45  ;;  %v753_v50 = vsel %vm396_vm4, %v2100_v38, %v2105_v44 }
 0x39b   : > { %v2110_v51 = vunpack.i.h.bf16 %v2108_v46  ;;  %v2109_v52 = vunpack.i.l.bf16 %v2108_v46  ;;  %v2113_v53 = vpop.permute.xlu0 %2112  ;;  %v853_v54 = vpack.c.bf16 %v757_v48, %v756_v47  ;;  %v852_v55 = vpack.c.bf16 %v753_v50, %v752_v49  ;;  %v2328_v46 = vld [vmem:[%s3408_s3] ss:$12 sps:$4 sm:$0xff]  }
 0x39c   : > { %v2115_v56 = vunpack.i.h.bf16 %v2113_v53  ;;  %v2114_v57 = vunpack.i.l.bf16 %v2113_v53 }
 0x39d   : > { %945 = vmatprep.subr.bf16.mxu1 %v853_v54 }
 0x39e   : > { %946 = vmatpush1.bf16.msra.mxu1 %v852_v55  ;;  %v2118_v58 = vpop.permute.xlu1 %2117  ;;  %v778_v59 = vsel %vm403_vm5, %v2114_v57, %v2109_v52  ;;  %v779_v60 = vsel %vm403_vm5, %v2115_v56, %v2110_v51  ;;  %v774_v61 = vsel %vm403_vm5, %v2109_v52, %v2114_v57  ;;  %v775_v62 = vsel %vm403_vm5, %v2110_v51, %v2115_v56  ;;  %v2331_v57 = vld [vmem:[%s3408_s3 + $0x1c] ss:$12 sps:$4 sm:$0xff]  }
 0x39f   : > { %v2120_v63 = vunpack.i.h.bf16 %v2118_v58  ;;  %v2119_v1 = vunpack.i.l.bf16 %v2118_v58  ;;  %v2123_v4 = vpop.permute.xlu0 %2122  ;;  %v855_v5 = vpack.c.bf16 %v779_v60, %v778_v59  ;;  %v854_v6 = vpack.c.bf16 %v775_v62, %v774_v61 }
 0x3a0   : > { %v2125_v7 = vunpack.i.h.bf16 %v2123_v4  ;;  %v2124_v11 = vunpack.i.l.bf16 %v2123_v4 }
 0x3a1   : > { %947 = vmatprep.subr.bf16.mxu1 %v855_v5  ;;  %v2333_v5 = vld [vmem:[%s3408_s3 + $0x18] ss:$12 sps:$4 sm:$0xff]  }
 0x3a2   : > { %948 = vmatpush1.bf16.msra.mxu1 %v854_v6  ;;  %v2128_v12 = vpop.permute.xlu1 %2127  ;;  %v780_v8 = vsel %vm403_vm5, %v2124_v11, %v2119_v1  ;;  %v781_v14 = vsel %vm403_vm5, %v2125_v7, %v2120_v63  ;;  %v776_v16 = vsel %vm403_vm5, %v2119_v1, %v2124_v11  ;;  %v777_v17 = vsel %vm403_vm5, %v2120_v63, %v2125_v7  ;;  %v2334_v6 = vld [vmem:[%s3408_s3 + $0x8] ss:$12 sps:$4 sm:$0xff]   ;;  %v2335_v7 = vld [vmem:[%s3408_s3 + $0x20] ss:$12 sps:$4 sm:$0xff]  }
 0x3a3   : > { %v2130_v19 = vunpack.i.h.bf16 %v2128_v12  ;;  %v2129_v20 = vunpack.i.l.bf16 %v2128_v12  ;;  %v2133_v21 = vpop.permute.xlu0 %2132  ;;  %v857_v22 = vpack.c.bf16 %v781_v14, %v780_v8  ;;  %v856_v23 = vpack.c.bf16 %v777_v17, %v776_v16  ;;  %v1796_v11 = vld [vmem:[%s3410_s5 + $0x2] sm:$0x3] }
 0x3a4   : > { %v2135_v24 = vunpack.i.h.bf16 %v2133_v21  ;;  %v2134_v25 = vunpack.i.l.bf16 %v2133_v21  ;;  %v1033_v12 = vrot.slane %v1796_v11, %v2819_v0  ;;  %v1037_v16 = vrot.slane %v1796_v11, %v2824_v2 }
 0x3a5   : > { %949 = vmatprep.subr.bf16.mxu1 %v857_v22 }
 0x3a6   : > { %950 = vmatpush1.bf16.msra.mxu1 %v856_v23  ;;  %v2138_v26 = vpop.permute.xlu1 %2137  ;;  %v802_v27 = vsel %vm410_vm7, %v2134_v25, %v2129_v20  ;;  %v803_v28 = vsel %vm410_vm7, %v2135_v24, %v2130_v19  ;;  %v798_v30 = vsel %vm410_vm7, %v2129_v20, %v2134_v25  ;;  %v799_v10 = vsel %vm410_vm7, %v2130_v19, %v2135_v24 }
 0x3a7   : > { %v2140_v31 = vunpack.i.h.bf16 %v2138_v26  ;;  %v2139_v13 = vunpack.i.l.bf16 %v2138_v26  ;;  %v2143_v32 = vpop.permute.xlu0 %2142  ;;  %v859_v15 = vpack.c.bf16 %v803_v28, %v802_v27  ;;  %v858_v33 = vpack.c.bf16 %v799_v10, %v798_v30 }
 0x3a8   : > { %v2145_v18 = vunpack.i.h.bf16 %v2143_v32  ;;  %v2144_v34 = vunpack.i.l.bf16 %v2143_v32 }
 0x3a9   : > { %951 = vmatprep.subr.bf16.mxu1 %v859_v15 }
 0x3aa   : > { %952 = vmatpush1.bf16.msra.mxu1 %v858_v33  ;;  %v2148_v29 = vpop.permute.xlu1 %2147  ;;  %v804_v36 = vsel %vm410_vm7, %v2144_v34, %v2139_v13  ;;  %v805_v37 = vsel %vm410_vm7, %v2145_v18, %v2140_v31  ;;  %v800_v35 = vsel %vm410_vm7, %v2139_v13, %v2144_v34  ;;  %v801_v39 = vsel %vm410_vm7, %v2140_v31, %v2145_v18 }
 0x3ab   : > { %v2150_v38 = vunpack.i.h.bf16 %v2148_v29  ;;  %v2149_v40 = vunpack.i.l.bf16 %v2148_v29  ;;  %v2153_v41 = vpop.permute.xlu0 %2152  ;;  %v861_v42 = vpack.c.bf16 %v805_v37, %v804_v36  ;;  %v860_v43 = vpack.c.bf16 %v801_v39, %v800_v35 }
 0x3ac   : > { %v2155_v44 = vunpack.i.h.bf16 %v2153_v41  ;;  %v2154_v45 = vunpack.i.l.bf16 %v2153_v41 }
 0x3ad   : > { %953 = vmatprep.subr.bf16.mxu1 %v861_v42 }
 0x3ae   : > { %v823_v47 = vsel %vm417_vm6, %v2150_v38, %v2155_v44  ;;  %v822_v48 = vsel %vm417_vm6, %v2149_v40, %v2154_v45  ;;  %954 = vmatpush1.bf16.msra.mxu1 %v860_v43  ;;  %v2158_v49 = vpop.permute.xlu1 %2157  ;;  %v826_v50 = vsel %vm417_vm6, %v2154_v45, %v2149_v40  ;;  %v827_v51 = vsel %vm417_vm6, %v2155_v44, %v2150_v38 }
 0x3af   : > { %v862_v52 = vpack.c.bf16 %v823_v47, %v822_v48  ;;  %v2160_v53 = vunpack.i.h.bf16 %v2158_v49  ;;  %v2159_v54 = vunpack.i.l.bf16 %v2158_v49  ;;  %v2163_v55 = vpop.permute.xlu0 %2162  ;;  %v863_v56 = vpack.c.bf16 %v827_v51, %v826_v50 }
 0x3b0   : > { %v2165_v58 = vunpack.i.h.bf16 %v2163_v55  ;;  %v2164_v59 = vunpack.i.l.bf16 %v2163_v55 }
 0x3b1   : > { %956 = vmatmul.mubr.bf16.vlgmr.msra.gmra.mrb[0].mxu1 %v2328_v46  ;;  %976 = vmatprep.subr.bf16.mxu1 %v863_v56 }
 0x3b2   : > { %v825_v60 = vsel %vm417_vm6, %v2160_v53, %v2165_v58  ;;  %v824_v61 = vsel %vm417_vm6, %v2159_v54, %v2164_v59  ;;  %977 = vmatpush1.bf16.msra.mxu1 %v862_v52  ;;  %v828_v62 = vsel %vm417_vm6, %v2164_v59, %v2159_v54  ;;  %v829_v63 = vsel %vm417_vm6, %v2165_v58, %v2160_v53 }
 0x3b3   : > { %v864_v1 = vpack.c.bf16 %v825_v60, %v824_v61  ;;  %v865_v4 = vpack.c.bf16 %v829_v63, %v828_v62  ;;  %965 = vmatprep.mubr.bf16.mxu1 %v2331_v57 }
 0x3b5   : > { %978 = vmatprep.subr.bf16.mxu1 %v865_v4 }
 0x3b6   : > { %979 = vmatpush1.bf16.msra.mxu1 %v864_v1 }
 0x3b9   : > { %966 = vmatmul.mubr.bf16.gmra.mrb[4].mxu1 %v2333_v5 }
 0x3ba   : > { %1008 = vmatprep.mubr.bf16.mxu1 %v2521_v3 }
 0x3bf   : > { %v869_v8 = vpop.permute.xlu1 %868 }
 0x3c0   : > { %v874_v20 = vpop.permute.xlu0 %873 }
 0x3c1   : > { %1803 = vmatmul.mubr.msk.bf16.vlgmr.msra.gmra.mrb[0].mxu1 %vm916_vm10, %v2334_v6 }
 0x3c2   : > { %1018 = vmatprep.mubr.bf16.mxu1 %v2521_v3 }
 0x3c3   : > { %v879_v15 = vpop.permute.xlu1 %878 }
 0x3c4   : > { %v884_v37 = vpop.permute.xlu0 %883 }
 0x3c9   : > { %1804 = vmatmul.mubr.msk.bf16.gmra.mrb[4].mxu1 %vm916_vm10, %v2335_v7 }
 0x3ca   : > { %1521 = vmatprep.mubr.bf16.mxu1 %v2521_v3 }
 0x494   : > { %v1010_v14 = vpop.f32.mrb[0].mxu1 }
 0x495   : > { %v3068_v17 = vadd.f32 %v1010_v14, %v869_v8  ;;  %v1012_v19 = vpop.f32.mrb[1].mxu1 }
 0x496   : > { %v3070_v21 = vadd.f32 %v1012_v19, %v869_v8  ;;  %v1014_v22 = vpop.f32.mrb[2].mxu1 }
 0x497   : > { %v1040_v23 = vmul.f32 %v3068_v17, %v1033_v12  ;;  %v3073_v24 = vadd.f32 %v1014_v22, %v874_v20  ;;  %v1016_v25 = vpop.f32.mrb[3].mxu1 }
 0x498   : > { %v1041_v26 = vmul.f32 %v3070_v21, %v1037_v16  ;;  %v3076_v27 = vadd.f32 %v1016_v25, %v874_v20 }
 0x499   : > { %v1067_v28 = vmul.f32 %v3068_v17, %v1040_v23  ;;  %v1042_v30 = vmul.f32 %v3073_v24, %v1033_v12 }
 0x49a   : > { %v1048_v10 = vadd.f32 %v1041_v26, %v1040_v23  ;;  %v1068_v31 = vmul.f32 %v3070_v21, %v1041_v26  ;;  %v1043_v13 = vmul.f32 %v3076_v27, %v1037_v16 }
 0x49b   : > { %v1069_v32 = vmul.f32 %v3073_v24, %v1042_v30 }
 0x49c   : > { %v1075_v33 = vadd.f32 %v1068_v31, %v1067_v28  ;;  %v1049_v18 = vadd.f32 %v1048_v10, %v1042_v30  ;;  %v1020_v34 = vpop.f32.mrb[4].mxu1  ;;  %v1070_v38 = vmul.f32 %v3076_v27, %v1043_v13 }
 0x49d   : > { %v3083_v29 = vadd.f32 %v1020_v34, %v879_v15  ;;  %v1022_v36 = vpop.f32.mrb[5].mxu1 }
 0x49e   : > { %v1076_v35 = vadd.f32 %v1075_v33, %v1069_v32  ;;  %v1050_v39 = vadd.f32 %v1049_v18, %v1043_v13  ;;  %v3086_v40 = vadd.f32 %v1022_v36, %v879_v15  ;;  %v1024_v41 = vpop.f32.mrb[6].mxu1 }
 0x49f   : > { %v1044_v42 = vmul.f32 %v3083_v29, %v1033_v12  ;;  %v3089_v43 = vadd.f32 %v1024_v41, %v884_v37  ;;  %v1026_v44 = vpop.f32.mrb[7].mxu1 }
 0x4a0   : > { %v1077_v45 = vadd.f32 %v1076_v35, %v1070_v38  ;;  %v1045_v46 = vmul.f32 %v3086_v40, %v1037_v16  ;;  %v3092_v47 = vadd.f32 %v1026_v44, %v884_v37 }
 0x4a1   : > { %v1051_v48 = vadd.f32 %v1050_v39, %v1044_v42  ;;  %v1071_v49 = vmul.f32 %v3083_v29, %v1044_v42  ;;  %v1046_v50 = vmul.f32 %v3089_v43, %v1033_v12 }
 0x4a2   : > { %v1072_v51 = vmul.f32 %v3086_v40, %v1045_v46  ;;  %v1047_v53 = vmul.f32 %v3092_v47, %v1037_v16 }
 0x4a3   : > { %v1078_v52 = vadd.f32 %v1077_v45, %v1071_v49  ;;  %v1052_v54 = vadd.f32 %v1051_v48, %v1045_v46  ;;  %v1073_v55 = vmul.f32 %v3089_v43, %v1046_v50 }
 0x4a4   : > { %v1074_v59 = vmul.f32 %v3092_v47, %v1047_v53 }
 0x4a5   : > { %v1053_v56 = vadd.f32 %v1052_v54, %v1046_v50  ;;  %v1079_v57 = vadd.f32 %v1078_v52, %v1072_v51  ;;  %v2338_v52 = vld [vmem:[%s3408_s3 + $0x34] ss:$12 sps:$4 sm:$0xff]   ;;  %v1814_v54 = vld [vmem:[%s3409_s4 + $0x28] sm:$0xff] }
 0x4a6   : > { %1458 = vmatprep.mubr.bf16.mxu0 %v2338_v52 }
 0x4a7   : > { %v1054_v58 = vadd.f32 %v1053_v56, %v1047_v53  ;;  %v1080_v60 = vadd.f32 %v1079_v57, %v1073_v55  ;;  %v1813_v53 = vld [vmem:[%s3409_s4 + $0x20] sm:$0xff]  ;;  %v1815_v55 = vld [vmem:[%s3409_s4 + $0x30] sm:$0xff]  ;;  %v1816_v56 = vld [vmem:[%s3409_s4 + $0x38] sm:$0xff] }
 0x4a9   : > { %1055 = vadd.xlane.f32.xlu1 %v1054_v58  ;;  %v1081_v61 = vadd.f32 %v1080_v60, %v1074_v59 }
 0x4ab   : > { %1082 = vadd.xlane.f32.xlu0 %v1081_v61 }
 0x536   : > { %v1056_v62 = vpop.xlane.xlu1 %1055 }
 0x537   : > { %v1057_v63 = vrot.slane %v1056_v62, 4 }
 0x538   : > { %v1083_v1 = vpop.xlane.xlu0 %1082 }
 0x539   : > { %v1058_v4 = vadd.f32 %v1057_v63, %v1056_v62  ;;  %v1084_v5 = vrot.slane %v1083_v1, 4 }
 0x53b   : > { %v1059_v6 = vrot.slane %v1058_v4, 2  ;;  %v1085_v7 = vadd.f32 %v1084_v5, %v1083_v1 }
 0x53d   : > { %v1086_v11 = vrot.slane %v1085_v7, 2  ;;  %v1060_v12 = vadd.f32 %v1059_v6, %v1058_v4 }
 0x53f   : > { %v1061_v8 = vrot.slane %v1060_v12, 1  ;;  %v1087_v14 = vadd.f32 %v1086_v11, %v1085_v7 }
 0x541   : > { %v1062_v16 = vadd.f32 %v1061_v8, %v1060_v12  ;;  %v1088_v19 = vrot.slane %v1087_v14, 1 }
 0x543   : > { %1872 = vpush %v1062_v16  ;;  %v1089_v20 = vadd.f32 %v1088_v19, %v1087_v14 }
 0x545   : > { %1874 = vpush %v1089_v20 }
 0x574   : > { %s1873_s10 = spop %1872 }
 0x575   : > { %s1066_s11 = smul.f32 0.00021701389, %s1873_s10  ;;  %s3447_s10 = smov 127  }
 0x576   : > { %s1875_s14 = spop %1874 }
 0x577   : > { %s1094_s16 = smul.f32 %s1066_s11, %s1066_s11  ;;  %v1096_v25 = vstv %s1066_s11  ;;  %s3448_s11 = smov 126  }
 0x578   : > { %s1093_s0 = smul.f32 0.00021701389, %s1875_s14  ;;  %v1097_v26 = vsub.f32 %v3068_v17, %v1096_v25  ;;  %v1098_v28 = vsub.f32 %v3070_v21, %v1096_v25  ;;  %v1099_v30 = vsub.f32 %v3073_v24, %v1096_v25  ;;  %v1100_v10 = vsub.f32 %v3076_v27, %v1096_v25 }
 0x579   : > { %v1101_v31 = vsub.f32 %v3083_v29, %v1096_v25  ;;  %v1102_v13 = vsub.f32 %v3086_v40, %v1096_v25  ;;  %v1103_v32 = vsub.f32 %v3089_v43, %v1096_v25  ;;  %v1104_v15 = vsub.f32 %v3092_v47, %v1096_v25 }
 0x57a   : > { %s1095_s13 = ssub.f32 %s1093_s0, %s1094_s16 }
 0x57c   : > { %s1105_s17 = sadd.f32 1e-05, %s1095_s13  ;;  %s1826_s13 = sshll.u32 %s2591_s9, 4 }
 0x57d   : > { %s2524_s9 = smov [#allocation8]  }
 0x57e   : > { %v1106_v22 = vstv %s1105_s17  ;;  %s349_s17 = scalar_lea.vmem [#allocation8], %s2739_s22 }
 0x57f   : > { %2346 = vrsqrt.f32 %v1106_v22 }
 0x589   : > { %v2347_v23 = vpop.eup %2346 }
 0x58a   : > { %1876 = vpush %v2347_v23 }
 0x5bb   : > { %s1877_s18 = spop %1876 }
 0x5bc   : > { %v1109_v33 = vstv %s1877_s18  ;;  %s1694_s18 = sshll.u32 %s349_s17, 4  ;;  %s3363_s18 = int_to_ptr.vmem [resolvable:$true] %s1694_s18 }
 0x5bd   : > { %v1110_v18 = vmul.f32 %v1109_v33, %v1097_v26  ;;  %v1111_v34 = vmul.f32 %v1109_v33, %v1098_v28  ;;  %v1112_v36 = vmul.f32 %v1109_v33, %v1099_v30  ;;  %v1113_v17 = vmul.f32 %v1109_v33, %v1100_v10 }
 0x5be   : > { %v1114_v37 = vmul.f32 %v1109_v33, %v1101_v31  ;;  %v1115_v21 = vmul.f32 %v1109_v33, %v1102_v13  ;;  %v1116_v35 = vmul.f32 %v1109_v33, %v1103_v32  ;;  %v1117_v24 = vmul.f32 %v1109_v33, %v1104_v15 }
 0x5bf   : > { %v1118_v39 = vmax.f32 %v1110_v18, 0.0  ;;  %v1119_v27 = vmax.f32 %v1111_v34, 0.0  ;;  %v1120_v38 = vmax.f32 %v1112_v36, 0.0  ;;  %v1121_v29 = vmax.f32 %v1113_v17, 0.0 }
 0x5c0   : > { %v1122_v41 = vmax.f32 %v1114_v37, 0.0  ;;  %v1123_v42 = vmax.f32 %v1115_v21, 0.0  ;;  %v1124_v40 = vmax.f32 %v1116_v35, 0.0  ;;  %v1125_v44 = vmax.f32 %v1117_v24, 0.0 }
 0x5c1   : > { %v2171_v43 = vpack.i.bf16 %v1121_v29, %v1119_v27  ;;  %v1335_v45 = vpack.c.bf16 %v1121_v29, %v1119_v27  ;;  %v2166_v46 = vpack.i.bf16 %v1120_v38, %v1118_v39  ;;  %v1334_v47 = vpack.c.bf16 %v1120_v38, %v1118_v39 }
 0x5c2   : > { %v1337_v48 = vpack.c.bf16 %v1125_v44, %v1123_v42  ;;  %v2176_v49 = vpack.i.bf16 %v1124_v40, %v1122_v41  ;;  %v2181_v50 = vpack.i.bf16 %v1125_v44, %v1123_v42  ;;  %v1336_v51 = vpack.c.bf16 %v1124_v40, %v1122_v41 }
 0x5c3   : > { %2172 = vrot.lane.b32.xlu1 %v2171_v43, %s3447_s10  ;;  %1426 = vmatprep.subr.bf16.mxu0 %v1335_v45 }
 0x5c4   : > { %2167 = vrot.lane.b32.xlu0 %v2166_v46, %s3447_s10  ;;  %1427 = vmatpush1.bf16.msra.mxu0 %v1334_v47 }
 0x5c5   : > { %1428 = vmatprep.subr.bf16.mxu0 %v1337_v48 }
 0x5c7   : > { %2177 = vrot.lane.b32.xlu1 %v2176_v49, %s3447_s10 }
 0x5c8   : > { %2182 = vrot.lane.b32.xlu0 %v2181_v50, %s3447_s10  ;;  %1429 = vmatpush1.bf16.msra.mxu0 %v1336_v51 }
 0x5cb   : > { %2187 = vrot.lane.b32.xlu1 %v2166_v46, %s3448_s11 }
 0x5cc   : > { %2192 = vrot.lane.b32.xlu0 %v2171_v43, %s3448_s11 }
 0x5cf   : > { %2197 = vrot.lane.b32.xlu1 %v2176_v49, %s3448_s11 }
 0x5d0   : > { %2202 = vrot.lane.b32.xlu0 %v2181_v50, %s3448_s11 }
 0x5d3   : > { %2207 = vrot.lane.b32.xlu1 %v2166_v46, %s3443_s19 }
 0x5d4   : > { %2212 = vrot.lane.b32.xlu0 %v2171_v43, %s3443_s19 }
 0x5d7   : > { %2217 = vrot.lane.b32.xlu1 %v2176_v49, %s3443_s19 }
 0x5d8   : > { %2222 = vrot.lane.b32.xlu0 %v2181_v50, %s3443_s19  ;;  %s3449_s19 = smov 95  }
 0x5db   : > { %2227 = vrot.lane.b32.xlu1 %v2166_v46, %s3444_s21 }
 0x5dc   : > { %2232 = vrot.lane.b32.xlu0 %v2171_v43, %s3444_s21 }
 0x5df   : > { %2237 = vrot.lane.b32.xlu1 %v2176_v49, %s3444_s21 }
 0x5e0   : > { %2242 = vrot.lane.b32.xlu0 %v2181_v50, %s3444_s21 }
 0x5e3   : > { %2247 = vrot.lane.b32.xlu1 %v2166_v46, %s3445_s15 }
 0x5e4   : > { %2252 = vrot.lane.b32.xlu0 %v2171_v43, %s3445_s15 }
 0x5e7   : > { %2257 = vrot.lane.b32.xlu1 %v2176_v49, %s3445_s15 }
 0x5e8   : > { %2262 = vrot.lane.b32.xlu0 %v2181_v50, %s3445_s15 }
 0x5eb   : > { %2267 = vrot.lane.b32.xlu1 %v2166_v46, %s3446_s26 }
 0x5ec   : > { %2272 = vrot.lane.b32.xlu0 %v2171_v43, %s3446_s26 }
 0x5ef   : > { %2277 = vrot.lane.b32.xlu1 %v2176_v49, %s3446_s26 }
 0x5f0   : > { %2282 = vrot.lane.b32.xlu0 %v2181_v50, %s3446_s26 }
 0x5f3   : > { %2287 = vrot.lane.b32.xlu1 %v2166_v46, %s3449_s19 }
 0x5f4   : > { %2292 = vrot.lane.b32.xlu0 %v2171_v43, %s3449_s19 }
 0x5f7   : > { %2297 = vrot.lane.b32.xlu1 %v2176_v49, %s3449_s19 }
 0x5f8   : > { %2302 = vrot.lane.b32.xlu0 %v2181_v50, %s3449_s19 }
 0x5fb   : > { %2307 = vrot.lane.b32.xlu1 %v2166_v46, %s2523_s25 }
 0x5fc   : > { %2312 = vrot.lane.b32.xlu0 %v2171_v43, %s2523_s25 }
 0x5ff   : > { %2317 = vrot.lane.b32.xlu1 %v2176_v49, %s2523_s25 }
 0x600   : > { %2322 = vrot.lane.b32.xlu0 %v2181_v50, %s2523_s25 }
 0x603   : > { %1372 = vperm.xlu1 %2005, %v1813_v53  }
 0x604   : > { %1377 = vperm.xlu0 %2004, %v1814_v54  }
 0x607   : > { %1382 = vperm.xlu1 %2005, %v1815_v55  }
 0x608   : > { %1387 = vperm.xlu0 %2004, %v1816_v56  }
 0x635   : > { %v2173_v57 = vpop.permute.xlu1 %2172 }
 0x636   : > { %v2175_v58 = vunpack.i.h.bf16 %v2173_v57  ;;  %v2174_v59 = vunpack.i.l.bf16 %v2173_v57  ;;  %v2168_v60 = vpop.permute.xlu0 %2167 }
 0x637   : > { %v2170_v61 = vunpack.i.h.bf16 %v2168_v60  ;;  %v2169_v62 = vunpack.i.l.bf16 %v2168_v60 }
 0x639   : > { %v1159_v63 = vsel %vm368_vm0, %v2170_v61, %v2175_v58  ;;  %v1158_v1 = vsel %vm368_vm0, %v2169_v62, %v2174_v59  ;;  %v2178_v4 = vpop.permute.xlu1 %2177  ;;  %v1162_v5 = vsel %vm368_vm0, %v2174_v59, %v2169_v62  ;;  %v1163_v6 = vsel %vm368_vm0, %v2175_v58, %v2170_v61 }
 0x63a   : > { %v1338_v7 = vpack.c.bf16 %v1159_v63, %v1158_v1  ;;  %v2180_v11 = vunpack.i.h.bf16 %v2178_v4  ;;  %v2179_v12 = vunpack.i.l.bf16 %v2178_v4  ;;  %v2183_v8 = vpop.permute.xlu0 %2182  ;;  %v1339_v14 = vpack.c.bf16 %v1163_v6, %v1162_v5 }
 0x63b   : > { %v2185_v16 = vunpack.i.h.bf16 %v2183_v8  ;;  %v2184_v19 = vunpack.i.l.bf16 %v2183_v8 }
 0x63c   : > { %1430 = vmatprep.subr.bf16.mxu0 %v1339_v14 }
 0x63d   : > { %v1161_v20 = vsel %vm368_vm0, %v2180_v11, %v2185_v16  ;;  %v1160_v22 = vsel %vm368_vm0, %v2179_v12, %v2184_v19  ;;  %1431 = vmatpush1.bf16.msra.mxu0 %v1338_v7  ;;  %v2188_v23 = vpop.permute.xlu1 %2187  ;;  %v1164_v25 = vsel %vm368_vm0, %v2184_v19, %v2179_v12  ;;  %v1165_v26 = vsel %vm368_vm0, %v2185_v16, %v2180_v11 }
 0x63e   : > { %v1340_v28 = vpack.c.bf16 %v1161_v20, %v1160_v22  ;;  %v2190_v30 = vunpack.i.h.bf16 %v2188_v23  ;;  %v2189_v10 = vunpack.i.l.bf16 %v2188_v23  ;;  %v2193_v31 = vpop.permute.xlu0 %2192  ;;  %v1341_v13 = vpack.c.bf16 %v1165_v26, %v1164_v25 }
 0x63f   : > { %v2195_v32 = vunpack.i.h.bf16 %v2193_v31  ;;  %v2194_v15 = vunpack.i.l.bf16 %v2193_v31 }
 0x640   : > { %1432 = vmatprep.subr.bf16.mxu0 %v1341_v13 }
 0x641   : > { %v1183_v33 = vsel %vm375_vm2, %v2190_v30, %v2195_v32  ;;  %v1182_v18 = vsel %vm375_vm2, %v2189_v10, %v2194_v15  ;;  %1433 = vmatpush1.bf16.msra.mxu0 %v1340_v28  ;;  %v2198_v34 = vpop.permute.xlu1 %2197  ;;  %v1186_v36 = vsel %vm375_vm2, %v2194_v15, %v2189_v10  ;;  %v1187_v17 = vsel %vm375_vm2, %v2195_v32, %v2190_v30 }
 0x642   : > { %v1342_v37 = vpack.c.bf16 %v1183_v33, %v1182_v18  ;;  %v2200_v21 = vunpack.i.h.bf16 %v2198_v34  ;;  %v2199_v35 = vunpack.i.l.bf16 %v2198_v34  ;;  %v2203_v24 = vpop.permute.xlu0 %2202  ;;  %v1343_v39 = vpack.c.bf16 %v1187_v17, %v1186_v36 }
 0x643   : > { %v2205_v27 = vunpack.i.h.bf16 %v2203_v24  ;;  %v2204_v38 = vunpack.i.l.bf16 %v2203_v24 }
 0x644   : > { %1434 = vmatprep.subr.bf16.mxu0 %v1343_v39 }
 0x645   : > { %v1185_v29 = vsel %vm375_vm2, %v2200_v21, %v2205_v27  ;;  %v1184_v41 = vsel %vm375_vm2, %v2199_v35, %v2204_v38  ;;  %1435 = vmatpush1.bf16.msra.mxu0 %v1342_v37  ;;  %v2208_v42 = vpop.permute.xlu1 %2207  ;;  %v1188_v40 = vsel %vm375_vm2, %v2204_v38, %v2199_v35  ;;  %v1189_v44 = vsel %vm375_vm2, %v2205_v27, %v2200_v21 }
 0x646   : > { %v1344_v43 = vpack.c.bf16 %v1185_v29, %v1184_v41  ;;  %v2210_v45 = vunpack.i.h.bf16 %v2208_v42  ;;  %v2209_v46 = vunpack.i.l.bf16 %v2208_v42  ;;  %v2213_v47 = vpop.permute.xlu0 %2212  ;;  %v1345_v48 = vpack.c.bf16 %v1189_v44, %v1188_v40 }
 0x647   : > { %v2215_v49 = vunpack.i.h.bf16 %v2213_v47  ;;  %v2214_v50 = vunpack.i.l.bf16 %v2213_v47 }
 0x648   : > { %1436 = vmatprep.subr.bf16.mxu0 %v1345_v48 }
 0x649   : > { %v1207_v51 = vsel %vm382_vm1, %v2210_v45, %v2215_v49  ;;  %v1206_v52 = vsel %vm382_vm1, %v2209_v46, %v2214_v50  ;;  %1437 = vmatpush1.bf16.msra.mxu0 %v1344_v43  ;;  %v2218_v53 = vpop.permute.xlu1 %2217  ;;  %v1210_v54 = vsel %vm382_vm1, %v2214_v50, %v2209_v46  ;;  %v1211_v55 = vsel %vm382_vm1, %v2215_v49, %v2210_v45 }
 0x64a   : > { %v1346_v56 = vpack.c.bf16 %v1207_v51, %v1206_v52  ;;  %v2220_v57 = vunpack.i.h.bf16 %v2218_v53  ;;  %v2219_v58 = vunpack.i.l.bf16 %v2218_v53  ;;  %v2223_v59 = vpop.permute.xlu0 %2222  ;;  %v1347_v60 = vpack.c.bf16 %v1211_v55, %v1210_v54 }
 0x64b   : > { %v2225_v61 = vunpack.i.h.bf16 %v2223_v59  ;;  %v2224_v62 = vunpack.i.l.bf16 %v2223_v59 }
 0x64c   : > { %1438 = vmatprep.subr.bf16.mxu0 %v1347_v60 }
 0x64d   : > { %v1209_v63 = vsel %vm382_vm1, %v2220_v57, %v2225_v61  ;;  %v1208_v1 = vsel %vm382_vm1, %v2219_v58, %v2224_v62  ;;  %1439 = vmatpush1.bf16.msra.mxu0 %v1346_v56  ;;  %v2228_v4 = vpop.permute.xlu1 %2227  ;;  %v1212_v5 = vsel %vm382_vm1, %v2224_v62, %v2219_v58  ;;  %v1213_v6 = vsel %vm382_vm1, %v2225_v61, %v2220_v57 }
 0x64e   : > { %v1348_v7 = vpack.c.bf16 %v1209_v63, %v1208_v1  ;;  %v2230_v11 = vunpack.i.h.bf16 %v2228_v4  ;;  %v2229_v12 = vunpack.i.l.bf16 %v2228_v4  ;;  %v2233_v8 = vpop.permute.xlu0 %2232  ;;  %v1349_v14 = vpack.c.bf16 %v1213_v6, %v1212_v5 }
 0x64f   : > { %v2235_v16 = vunpack.i.h.bf16 %v2233_v8  ;;  %v2234_v19 = vunpack.i.l.bf16 %v2233_v8 }
 0x650   : > { %1440 = vmatprep.subr.bf16.mxu0 %v1349_v14 }
 0x651   : > { %v1231_v20 = vsel %vm389_vm3, %v2230_v11, %v2235_v16  ;;  %v1230_v22 = vsel %vm389_vm3, %v2229_v12, %v2234_v19  ;;  %1441 = vmatpush1.bf16.msra.mxu0 %v1348_v7  ;;  %v2238_v23 = vpop.permute.xlu1 %2237  ;;  %v1234_v25 = vsel %vm389_vm3, %v2234_v19, %v2229_v12  ;;  %v1235_v26 = vsel %vm389_vm3, %v2235_v16, %v2230_v11 }
 0x652   : > { %v1350_v28 = vpack.c.bf16 %v1231_v20, %v1230_v22  ;;  %v2240_v30 = vunpack.i.h.bf16 %v2238_v23  ;;  %v2239_v10 = vunpack.i.l.bf16 %v2238_v23  ;;  %v2243_v31 = vpop.permute.xlu0 %2242  ;;  %v1351_v13 = vpack.c.bf16 %v1235_v26, %v1234_v25 }
 0x653   : > { %v2245_v32 = vunpack.i.h.bf16 %v2243_v31  ;;  %v2244_v15 = vunpack.i.l.bf16 %v2243_v31 }
 0x654   : > { %1442 = vmatprep.subr.bf16.mxu0 %v1351_v13 }
 0x655   : > { %v1233_v33 = vsel %vm389_vm3, %v2240_v30, %v2245_v32  ;;  %v1232_v18 = vsel %vm389_vm3, %v2239_v10, %v2244_v15  ;;  %1443 = vmatpush1.bf16.msra.mxu0 %v1350_v28  ;;  %v2248_v34 = vpop.permute.xlu1 %2247  ;;  %v1236_v36 = vsel %vm389_vm3, %v2244_v15, %v2239_v10  ;;  %v1237_v17 = vsel %vm389_vm3, %v2245_v32, %v2240_v30 }
 0x656   : > { %v1352_v37 = vpack.c.bf16 %v1233_v33, %v1232_v18  ;;  %v2250_v21 = vunpack.i.h.bf16 %v2248_v34  ;;  %v2249_v35 = vunpack.i.l.bf16 %v2248_v34  ;;  %v2253_v24 = vpop.permute.xlu0 %2252  ;;  %v1353_v39 = vpack.c.bf16 %v1237_v17, %v1236_v36 }
 0x657   : > { %v2255_v27 = vunpack.i.h.bf16 %v2253_v24  ;;  %v2254_v38 = vunpack.i.l.bf16 %v2253_v24 }
 0x658   : > { %1444 = vmatprep.subr.bf16.mxu0 %v1353_v39 }
 0x659   : > { %v1255_v29 = vsel %vm396_vm4, %v2250_v21, %v2255_v27  ;;  %v1254_v41 = vsel %vm396_vm4, %v2249_v35, %v2254_v38  ;;  %1445 = vmatpush1.bf16.msra.mxu0 %v1352_v37  ;;  %v2258_v42 = vpop.permute.xlu1 %2257  ;;  %v1258_v40 = vsel %vm396_vm4, %v2254_v38, %v2249_v35  ;;  %v1259_v44 = vsel %vm396_vm4, %v2255_v27, %v2250_v21 }
 0x65a   : > { %v1354_v43 = vpack.c.bf16 %v1255_v29, %v1254_v41  ;;  %v2260_v45 = vunpack.i.h.bf16 %v2258_v42  ;;  %v2259_v46 = vunpack.i.l.bf16 %v2258_v42  ;;  %v2263_v47 = vpop.permute.xlu0 %2262  ;;  %v1355_v48 = vpack.c.bf16 %v1259_v44, %v1258_v40 }
 0x65b   : > { %v2265_v49 = vunpack.i.h.bf16 %v2263_v47  ;;  %v2264_v50 = vunpack.i.l.bf16 %v2263_v47 }
 0x65c   : > { %1446 = vmatprep.subr.bf16.mxu0 %v1355_v48 }
 0x65d   : > { %v1257_v51 = vsel %vm396_vm4, %v2260_v45, %v2265_v49  ;;  %v1256_v52 = vsel %vm396_vm4, %v2259_v46, %v2264_v50  ;;  %1447 = vmatpush1.bf16.msra.mxu0 %v1354_v43  ;;  %v2268_v53 = vpop.permute.xlu1 %2267  ;;  %v1260_v54 = vsel %vm396_vm4, %v2264_v50, %v2259_v46  ;;  %v1261_v55 = vsel %vm396_vm4, %v2265_v49, %v2260_v45 }
 0x65e   : > { %v1356_v56 = vpack.c.bf16 %v1257_v51, %v1256_v52  ;;  %v2270_v57 = vunpack.i.h.bf16 %v2268_v53  ;;  %v2269_v58 = vunpack.i.l.bf16 %v2268_v53  ;;  %v2273_v59 = vpop.permute.xlu0 %2272  ;;  %v1357_v60 = vpack.c.bf16 %v1261_v55, %v1260_v54  ;;  %v2336_v51 = vld [vmem:[%s3408_s3 + $0x30] ss:$12 sps:$4 sm:$0xff]  }
 0x65f   : > { %v2275_v61 = vunpack.i.h.bf16 %v2273_v59  ;;  %v2274_v62 = vunpack.i.l.bf16 %v2273_v59 }
 0x660   : > { %1448 = vmatprep.subr.bf16.mxu0 %v1357_v60 }
 0x661   : > { %v1279_v63 = vsel %vm403_vm5, %v2270_v57, %v2275_v61  ;;  %v1278_v1 = vsel %vm403_vm5, %v2269_v58, %v2274_v62  ;;  %1449 = vmatpush1.bf16.msra.mxu0 %v1356_v56  ;;  %v2278_v4 = vpop.permute.xlu1 %2277  ;;  %v1282_v5 = vsel %vm403_vm5, %v2274_v62, %v2269_v58  ;;  %v1283_v6 = vsel %vm403_vm5, %v2275_v61, %v2270_v57  ;;  %v2339_v62 = vld [vmem:[%s3408_s3 + $0x4c] ss:$12 sps:$4 sm:$0xff]  }
 0x662   : > { %v1358_v7 = vpack.c.bf16 %v1279_v63, %v1278_v1  ;;  %v2280_v11 = vunpack.i.h.bf16 %v2278_v4  ;;  %v2279_v12 = vunpack.i.l.bf16 %v2278_v4  ;;  %v2283_v8 = vpop.permute.xlu0 %2282  ;;  %v1359_v14 = vpack.c.bf16 %v1283_v6, %v1282_v5 }
 0x663   : > { %v2285_v16 = vunpack.i.h.bf16 %v2283_v8  ;;  %v2284_v19 = vunpack.i.l.bf16 %v2283_v8  ;;  %v2341_v8 = vld [vmem:[%s3408_s3 + $0x48] ss:$12 sps:$4 sm:$0xff]  }
 0x664   : > { %1450 = vmatprep.subr.bf16.mxu0 %v1359_v14  ;;  %v2342_v14 = vld [vmem:[%s3408_s3 + $0x50] ss:$12 sps:$4 sm:$0xff]  }
 0x665   : > { %v1281_v20 = vsel %vm403_vm5, %v2280_v11, %v2285_v16  ;;  %v1280_v22 = vsel %vm403_vm5, %v2279_v12, %v2284_v19  ;;  %1451 = vmatpush1.bf16.msra.mxu0 %v1358_v7  ;;  %v2288_v23 = vpop.permute.xlu1 %2287  ;;  %v1284_v25 = vsel %vm403_vm5, %v2284_v19, %v2279_v12  ;;  %v1285_v26 = vsel %vm403_vm5, %v2285_v16, %v2280_v11 }
 0x666   : > { %v1360_v28 = vpack.c.bf16 %v1281_v20, %v1280_v22  ;;  %v2290_v30 = vunpack.i.h.bf16 %v2288_v23  ;;  %v2289_v10 = vunpack.i.l.bf16 %v2288_v23  ;;  %v2293_v31 = vpop.permute.xlu0 %2292  ;;  %v1361_v13 = vpack.c.bf16 %v1285_v26, %v1284_v25 }
 0x667   : > { %v2295_v32 = vunpack.i.h.bf16 %v2293_v31  ;;  %v2294_v15 = vunpack.i.l.bf16 %v2293_v31 }
 0x668   : > { %1452 = vmatprep.subr.bf16.mxu0 %v1361_v13 }
 0x669   : > { %v1303_v33 = vsel %vm410_vm7, %v2290_v30, %v2295_v32  ;;  %v1302_v18 = vsel %vm410_vm7, %v2289_v10, %v2294_v15  ;;  %1453 = vmatpush1.bf16.msra.mxu0 %v1360_v28  ;;  %v2298_v34 = vpop.permute.xlu1 %2297  ;;  %v1306_v36 = vsel %vm410_vm7, %v2294_v15, %v2289_v10  ;;  %v1307_v17 = vsel %vm410_vm7, %v2295_v32, %v2290_v30 }
 0x66a   : > { %v1362_v37 = vpack.c.bf16 %v1303_v33, %v1302_v18  ;;  %v2300_v21 = vunpack.i.h.bf16 %v2298_v34  ;;  %v2299_v35 = vunpack.i.l.bf16 %v2298_v34  ;;  %v2303_v24 = vpop.permute.xlu0 %2302  ;;  %v1363_v39 = vpack.c.bf16 %v1307_v17, %v1306_v36  ;;  %v3310_v17 = vld [vmem:[%s3410_s5 + $0x4] sm:$0x3] }
 0x66b   : > { %v2305_v27 = vunpack.i.h.bf16 %v2303_v24  ;;  %v2304_v38 = vunpack.i.l.bf16 %v2303_v24 }
 0x66c   : > { %1454 = vmatprep.subr.bf16.mxu0 %v1363_v39 }
 0x66d   : > { %v1305_v29 = vsel %vm410_vm7, %v2300_v21, %v2305_v27  ;;  %v1304_v41 = vsel %vm410_vm7, %v2299_v35, %v2304_v38  ;;  %1455 = vmatpush1.bf16.msra.mxu0 %v1362_v37  ;;  %v2308_v42 = vpop.permute.xlu1 %2307  ;;  %v1308_v40 = vsel %vm410_vm7, %v2304_v38, %v2299_v35  ;;  %v1309_v44 = vsel %vm410_vm7, %v2305_v27, %v2300_v21 }
 0x66e   : > { %v1364_v43 = vpack.c.bf16 %v1305_v29, %v1304_v41  ;;  %v2310_v45 = vunpack.i.h.bf16 %v2308_v42  ;;  %v2309_v46 = vunpack.i.l.bf16 %v2308_v42  ;;  %v2313_v47 = vpop.permute.xlu0 %2312  ;;  %v1365_v48 = vpack.c.bf16 %v1309_v44, %v1308_v40 }
 0x66f   : > { %v2315_v49 = vunpack.i.h.bf16 %v2313_v47  ;;  %v2314_v50 = vunpack.i.l.bf16 %v2313_v47  ;;  %v1536_v35 = vrot.slane %v3310_v17, %v2819_v0  ;;  %v1540_v27 = vrot.slane %v3310_v17, %v2824_v2 }
 0x670   : > { %1456 = vmatprep.subr.bf16.mxu0 %v1365_v48 }
 0x671   : > { %v1327_v52 = vsel %vm417_vm6, %v2310_v45, %v2315_v49  ;;  %v1326_v53 = vsel %vm417_vm6, %v2309_v46, %v2314_v50  ;;  %1457 = vmatpush1.bf16.msra.mxu0 %v1364_v43  ;;  %v2318_v54 = vpop.permute.xlu1 %2317  ;;  %v1330_v55 = vsel %vm417_vm6, %v2314_v50, %v2309_v46  ;;  %v1331_v56 = vsel %vm417_vm6, %v2315_v49, %v2310_v45 }
 0x672   : > { %v1366_v57 = vpack.c.bf16 %v1327_v52, %v1326_v53  ;;  %v2320_v58 = vunpack.i.h.bf16 %v2318_v54  ;;  %v2319_v59 = vunpack.i.l.bf16 %v2318_v54  ;;  %v2323_v60 = vpop.permute.xlu0 %2322  ;;  %v1367_v61 = vpack.c.bf16 %v1331_v56, %v1330_v55 }
 0x673   : > { %v2325_v63 = vunpack.i.h.bf16 %v2323_v60  ;;  %v2324_v1 = vunpack.i.l.bf16 %v2323_v60 }
 0x674   : > { %1459 = vmatmul.mubr.bf16.vlgmr.msra.gmra.mrb[8].mxu0 %v2336_v51  ;;  %1479 = vmatprep.subr.bf16.mxu0 %v1367_v61 }
 0x675   : > { %v1329_v4 = vsel %vm417_vm6, %v2320_v58, %v2325_v63  ;;  %v1328_v5 = vsel %vm417_vm6, %v2319_v59, %v2324_v1  ;;  %1830 = vmatprep.subr.bf16.mxu1 %v1367_v61  ;;  %1480 = vmatpush1.bf16.msra.mxu0 %v1366_v57  ;;  %v1332_v6 = vsel %vm417_vm6, %v2324_v1, %v2319_v59 }
 0x676   : > { %v1368_v7 = vpack.c.bf16 %v1329_v4, %v1328_v5  ;;  %1832 = vmatpush1.bf16.msra.mxu1 %v1366_v57  ;;  %v1333_v11 = vsel %vm417_vm6, %v2325_v63, %v2320_v58  ;;  %1468 = vmatprep.mubr.bf16.mxu0 %v2339_v62 }
 0x677   : > { %v1369_v12 = vpack.c.bf16 %v1333_v11, %v1332_v6 }
 0x679   : > { %1481 = vmatprep.subr.bf16.mxu0 %v1369_v12  ;;  %1831 = vmatprep.subr.bf16.mxu1 %v1369_v12 }
 0x67a   : > { %1482 = vmatpush1.bf16.msra.mxu0 %v1368_v7  ;;  %1833 = vmatpush1.bf16.msra.mxu1 %v1368_v7 }
 0x67c   : > { %1469 = vmatmul.mubr.bf16.gmra.mrb[12].mxu0 %v2341_v8 }
 0x67d   : > { %1825 = vmatmul.mubr.msk.bf16.vlgmr.msra.gmra.mrb[8].mxu1 %vm916_vm10, %v2342_v14  ;;  %1511 = vmatprep.mubr.bf16.mxu0 %v2521_v3 }
 0x682   : > { %v1373_v16 = vpop.permute.xlu1 %1372 }
 0x683   : > { %v1378_v19 = vpop.permute.xlu0 %1377 }
 0x684   : > { %1824 = vmatmul.mubr.msk.bf16.vlgmr.msra.gmra.mrb[8].mxu0 %vm916_vm10, %v2343_v9 }
 0x686   : > { %v1383_v20 = vpop.permute.xlu1 %1382 }
 0x687   : > { %v1388_v22 = vpop.permute.xlu0 %1387 }
 0x74f   : > { %v1470_v23 = vpop.f32.mrb[12].mxu0 }
 0x750   : > { %v1471_v25 = vadd.f32 %v1470_v23, %v1383_v20  ;;  %v1472_v26 = vpop.f32.mrb[13].mxu0  ;;  %v1523_v28 = vpop.f32.mrb[8].mxu1 }
 0x751   : > { %v1473_v30 = vadd.f32 %v1472_v26, %v1383_v20  ;;  %v1474_v10 = vpop.f32.mrb[14].mxu0  ;;  %v1525_v31 = vpop.f32.mrb[9].mxu1 }
 0x752   : > { %v1475_v13 = vadd.f32 %v1474_v10, %v1388_v22  ;;  %v3301_v32 = vadd.f32 %v1523_v28, %v1471_v25  ;;  %v1476_v3 = vpop.f32.mrb[15].mxu0  ;;  %v1527_v15 = vpop.f32.mrb[10].mxu1 }
 0x753   : > { %v1477_v33 = vadd.f32 %v1476_v3, %v1388_v22  ;;  %v3303_v18 = vadd.f32 %v1525_v31, %v1473_v30  ;;  %v1529_v34 = vpop.f32.mrb[11].mxu1 }
 0x754   : > { %v3305_v36 = vadd.f32 %v1527_v15, %v1475_v13  ;;  %v1547_v51 = vmul.f32 %v1536_v35, %v3301_v32 }
 0x755   : > { %v3312_v37 = vadd.f32 %v1529_v34, %v1477_v33  ;;  %v1548_v54 = vmul.f32 %v1540_v27, %v3303_v18  ;;  %v1629_v34 = vmul.f32 0.01, %v3310_v17 }
 0x756   : > { %v1574_v58 = vmul.f32 %v1547_v51, %v3301_v32  ;;  %v1549_v59 = vmul.f32 %v1536_v35, %v3305_v36 }
 0x757   : > { %v1513_v21 = vpop.f32.mrb[8].mxu0  ;;  %v1575_v62 = vmul.f32 %v1548_v54, %v3303_v18  ;;  %v1550_v63 = vmul.f32 %v1540_v27, %v3312_v37 }
 0x758   : > { %v3316_v24 = vadd.f32 %v1513_v21, %v1373_v16  ;;  %v1515_v39 = vpop.f32.mrb[9].mxu0  ;;  %v1576_v5 = vmul.f32 %v1549_v59, %v3305_v36 }
 0x759   : > { %v3320_v38 = vadd.f32 %v1515_v39, %v1373_v16  ;;  %v1517_v29 = vpop.f32.mrb[10].mxu0  ;;  %v1577_v12 = vmul.f32 %v1550_v63, %v3312_v37  ;;  %v1634_v39 = vrot.slane %v1629_v34, %v2819_v0 }
 0x75a   : > { %v1543_v41 = vmul.f32 %v3316_v24, %v1536_v35  ;;  %v3323_v42 = vadd.f32 %v1517_v29, %v1378_v19  ;;  %v1519_v40 = vpop.f32.mrb[11].mxu0 }
 0x75b   : > { %v1544_v44 = vmul.f32 %v3320_v38, %v1540_v27  ;;  %v3326_v43 = vadd.f32 %v1519_v40, %v1378_v19 }
 0x75c   : > { %v1570_v45 = vmul.f32 %v3316_v24, %v1543_v41  ;;  %v1545_v46 = vmul.f32 %v3323_v42, %v1536_v35 }
 0x75d   : > { %v1551_v47 = vadd.f32 %v1544_v44, %v1543_v41  ;;  %v1571_v48 = vmul.f32 %v3320_v38, %v1544_v44  ;;  %v1546_v49 = vmul.f32 %v3326_v43, %v1540_v27  ;;  %v1638_v27 = vrot.slane %v1629_v34, %v2824_v2 }
 0x75e   : > { %v1572_v50 = vmul.f32 %v3323_v42, %v1545_v46 }
 0x75f   : > { %v1578_v52 = vadd.f32 %v1571_v48, %v1570_v45  ;;  %v1552_v53 = vadd.f32 %v1551_v47, %v1545_v46  ;;  %v1573_v57 = vmul.f32 %v3326_v43, %v1546_v49 }
 0x761   : > { %v1579_v55 = vadd.f32 %v1578_v52, %v1572_v50  ;;  %v1553_v56 = vadd.f32 %v1552_v53, %v1546_v49 }
 0x763   : > { %v1580_v60 = vadd.f32 %v1579_v55, %v1573_v57  ;;  %v1554_v61 = vadd.f32 %v1553_v56, %v1547_v51 }
 0x765   : > { %v1555_v1 = vadd.f32 %v1554_v61, %v1548_v54  ;;  %v1581_v4 = vadd.f32 %v1580_v60, %v1574_v58 }
 0x767   : > { %v1556_v6 = vadd.f32 %v1555_v1, %v1549_v59  ;;  %v1582_v7 = vadd.f32 %v1581_v4, %v1575_v62 }
 0x769   : > { %v1557_v11 = vadd.f32 %v1556_v6, %v1550_v63  ;;  %v1583_v8 = vadd.f32 %v1582_v7, %v1576_v5  ;;  %v1662_v5 = vld [vmem:[#allocation7 + $0x8] sm:$0xff]  ;;  %v1661_v6 = vld [vmem:[#allocation7] sm:$0xff] }
 0x76b   : > { %1558 = vadd.xlane.f32.xlu1 %v1557_v11  ;;  %v1584_v14 = vadd.f32 %v1583_v8, %v1577_v12 }
 0x76d   : > { %1585 = vadd.xlane.f32.xlu0 %v1584_v14  ;;  %v1663_v14 = vld [vmem:[#allocation7 + $0x10] sm:$0xff] }
 0x7f8   : > { %v1559_v9 = vpop.xlane.xlu1 %1558 }
 0x7f9   : > { %v1560_v16 = vrot.slane %v1559_v9, 4 }
 0x7fa   : > { %v1586_v19 = vpop.xlane.xlu0 %1585 }
 0x7fb   : > { %v1561_v20 = vadd.f32 %v1560_v16, %v1559_v9  ;;  %v1587_v22 = vrot.slane %v1586_v19, 4  ;;  %v1664_v9 = vld [vmem:[#allocation7 + $0x18] sm:$0xff] }
 0x7fd   : > { %v1562_v23 = vrot.slane %v1561_v20, 2  ;;  %v1588_v25 = vadd.f32 %v1587_v22, %v1586_v19 }
 0x7ff   : > { %v1589_v26 = vrot.slane %v1588_v25, 2  ;;  %v1563_v28 = vadd.f32 %v1562_v23, %v1561_v20 }
 0x801   : > { %v1564_v30 = vrot.slane %v1563_v28, 1  ;;  %v1590_v10 = vadd.f32 %v1589_v26, %v1588_v25 }
 0x803   : > { %v1565_v31 = vadd.f32 %v1564_v30, %v1563_v28  ;;  %v1591_v13 = vrot.slane %v1590_v10, 1 }
 0x805   : > { %1878 = vpush %v1565_v31  ;;  %v1592_v3 = vadd.f32 %v1591_v13, %v1590_v10 }
 0x807   : > { %1880 = vpush %v1592_v3  ;;  %v1678_v3 = vld [vmem:[%s3412_s7] sm:$0x1] }
 0x836   : > { %s1879_s10 = spop %1878 }
 0x837   : > { %s1569_s25 = smul.f32 0.0003125, %s1879_s10 }
 0x838   : > { %s1881_s11 = spop %1880 }
 0x839   : > { %s1597_s19 = smul.f32 %s1569_s25, %s1569_s25  ;;  %v1599_v21 = vstv %s1569_s25 }
 0x83a   : > { %s1596_s21 = smul.f32 0.0003125, %s1881_s11  ;;  %v1602_v35 = vsub.f32 %v3323_v42, %v1599_v21  ;;  %v1603_v29 = vsub.f32 %v3326_v43, %v1599_v21  ;;  %v1600_v41 = vsub.f32 %v3316_v24, %v1599_v21  ;;  %v1601_v40 = vsub.f32 %v3320_v38, %v1599_v21  ;;  %s3361_s11 = scalar_lea.hbm %s3413_s8, %s1826_s13 }
 0x83b   : > { %v1606_v44 = vsub.f32 %v3305_v36, %v1599_v21  ;;  %v1607_v46 = vsub.f32 %v3312_v37, %v1599_v21  ;;  %v1604_v17 = vsub.f32 %v3301_v32, %v1599_v21  ;;  %v1605_v42 = vsub.f32 %v3303_v18, %v1599_v21 }
 0x83c   : > { %s1598_s14 = ssub.f32 %s1596_s21, %s1597_s19  ;;  %s1682_s19 = scalar_lea.sflag [#allocation4], %s2739_s22 }
 0x83d   : > { %s2436_s21 = scalar_lea.vmem %s3363_s18, 16 }
 0x83e   : > { %s1608_s15 = sadd.f32 1e-05, %s1598_s14  ;;  %p2437_p8 = scmp.ne.s32.totalorder %s3363_s18, %s2436_s21 }
 0x83f   : > { %s2440_s14 = sshll.u32 %s2524_s9, 4  ;;  %s2441_s14 = int_to_ptr.vmem [resolvable:$false] %s2440_s14 }
 0x840   : > { %v1609_v15 = vstv %s1608_s15  ;;  %p2438_p1 = pnand %p2437_p8, %p3450_p0  ;;  %s2442_s15 = scalar_lea.vmem %s2441_s14, 32 }
 0x841   : > { %2348 = vrsqrt.f32 %v1609_v15  ;;  %p2443_p5 = scmp.lt.s32.totalorder %s3363_s18, %s2441_s14  ;;  %p2444_p9 = scmp.lt.s32.totalorder %s2442_s15, %s2436_s21 }
 0x842   : > { %p2439_p3 = pneg %p2438_p1 }
 0x843   : > { %p2445_p12 = por %p2444_p9, %p2443_p5 }
 0x845   : > { %p2446_p2 = pnand %p2445_p12, %p2439_p3 }
 0x84b   : > { %v2349_v33 = vpop.eup %2348 }
 0x84c   : > { %1882 = vpush %v2349_v33 }
 0x87d   : > { %s1883_s26 = spop %1882 }
 0x87e   : > { %v1612_v45 = vstv %s1883_s26 }
 0x87f   : > { %v1615_v47 = vmul.f32 %v1612_v45, %v1602_v35  ;;  %v1616_v0 = vmul.f32 %v1612_v45, %v1603_v29  ;;  %v1613_v48 = vmul.f32 %v1612_v45, %v1600_v41  ;;  %v1614_v2 = vmul.f32 %v1612_v45, %v1601_v40 }
 0x880   : > { %v1619_v49 = vmul.f32 %v1612_v45, %v1606_v44  ;;  %v1620_v50 = vmul.f32 %v1612_v45, %v1607_v46  ;;  %v1617_v43 = vmul.f32 %v1612_v45, %v1604_v17  ;;  %v1618_v51 = vmul.f32 %v1612_v45, %v1605_v42 }
 0x881   : > { %v1623_v24 = vmax.f32 %v1615_v47, 0.0  ;;  %v1624_v52 = vmax.f32 %v1616_v0, 0.0  ;;  %v1621_v38 = vmax.f32 %v1613_v48, 0.0  ;;  %v1622_v53 = vmax.f32 %v1614_v2, 0.0 }
 0x882   : > { %v1627_v36 = vmax.f32 %v1619_v49, 0.0  ;;  %v1628_v54 = vmax.f32 %v1620_v50, 0.0  ;;  %v1625_v55 = vmax.f32 %v1617_v43, 0.0  ;;  %v1626_v37 = vmax.f32 %v1618_v51, 0.0 }
 0x883   : > { %v1643_v56 = vmul.f32 %v1634_v39, %v1623_v24  ;;  %v1644_v32 = vmul.f32 %v1638_v27, %v1624_v52  ;;  %v1641_v57 = vmul.f32 %v1634_v39, %v1621_v38  ;;  %v1642_v18 = vmul.f32 %v1638_v27, %v1622_v53 }
 0x884   : > { %v1647_v58 = vmul.f32 %v1634_v39, %v1627_v36  ;;  %v1648_v59 = vmul.f32 %v1638_v27, %v1628_v54  ;;  %v1645_v62 = vmul.f32 %v1634_v39, %v1625_v55  ;;  %v1646_v63 = vmul.f32 %v1638_v27, %v1626_v37 }
 0x885   : > { %v1652_v60 = vadd.f32 %v1644_v32, %v1643_v56  ;;  %v1649_v61 = vadd.f32 %v1642_v18, %v1641_v57 }
 0x886   : > { %v1658_v1 = vadd.f32 %v1648_v59, %v1647_v58  ;;  %v1655_v4 = vadd.f32 %v1646_v63, %v1645_v62 }
 0x887   : > { %1653 = vadd.xlane.f32.xlu1 %v1652_v60  ;;  %1650 = vadd.xlane.f32.xlu0 %v1649_v61 }
 0x88b   : > { %1659 = vadd.xlane.f32.xlu1 %v1658_v1  ;;  %1656 = vadd.xlane.f32.xlu0 %v1655_v4 }
 0x914   : > { %v1654_v7 = vpop.xlane.xlu1 %1653  ;;  %v1651_v11 = vpop.xlane.xlu0 %1650 }
 0x915   : > { %v1666_v12 = vmul.f32 %v1662_v5, %v1654_v7  ;;  %v1665_v8 = vmul.f32 %v1661_v6, %v1651_v11 }
 0x917   : > { %v1669_v20 = vadd.f32 %v1666_v12, %v1665_v8 }
 0x918   : > { %v1660_v16 = vpop.xlane.xlu1 %1659  ;;  %v1657_v19 = vpop.xlane.xlu0 %1656 }
 0x919   : > { %v1667_v22 = vmul.f32 %v1663_v14, %v1657_v19  ;;  %v1668_v23 = vmul.f32 %v1664_v9, %v1660_v16 }
 0x91b   : > { %v1670_v25 = vadd.f32 %v1669_v20, %v1667_v22 }
 0x91d   : > { %v1671_v26 = vadd.f32 %v1670_v25, %v1668_v23 }
 0x91f   : > { %v1672_v28 = vrot.slane %v1671_v26, 4 }
 0x921   : > { %v1673_v30 = vadd.f32 %v1672_v28, %v1671_v26 }
 0x923   : > { %v1674_v10 = vrot.slane %v1673_v30, 2 }
 0x925   : > { %v1675_v31 = vadd.f32 %v1674_v10, %v1673_v30 }
 0x927   : > { %v1676_v13 = vrot.slane %v1675_v31, 1 }
 0x929   : > { %v1677_v15 = vadd.f32 %v1676_v13, %v1675_v31 }
 0x92b   : > { %v1679_v33 = vadd.f32 %v1678_v3, %v1677_v15 }
 0x92d   : > { %1680 = vst [vmem:[%s349_s17] sm:$0x1] %v1679_v33 }
 0x92e   : > { %2449 = shalt.err (!%p2446_p2)
}
 0x92f   : > { %s2450_s22 = scalar_lea.hbm %s3361_s11, 16  ;;  %s2454_s0 = scalar_lea.hbm %s3413_s8, 32 }
 0x930   : > { %p2451_p13 = scmp.ne.s32.totalorder %s3361_s11, %s2450_s22  ;;  %p2455_p4 = scmp.lt.u32.totalorder %s3361_s11, %s3413_s8 }
 0x931   : > { %p2456_p7 = scmp.lt.u32.totalorder %s2454_s0, %s2450_s22  ;;  %p2458_p8 = scmp.lt.u32.totalorder %s2450_s22, %s3361_s11 }
 0x932   : > { %p2452_p6 = pnand %p2451_p13, %p3450_p0 }
 0x933   : > { %p2457_p11 = por %p2456_p7, %p2455_p4 }
 0x934   : > { %p2453_p10 = pneg %p2452_p6 }
 0x935   : > { %p2459_p1 = por %p2458_p8, %p2457_p11 }
 0x937   : > { %p2460_p3 = pnand %p2459_p1, %p2453_p10 }
 0x939   : > { %2463 = shalt.err (!%p2460_p3)
}
 0x93a   : > { %1894 = dma.vmem_to_hbm [thread:$0]  (%p3450_p0), %s3363_s18, 16, %s3361_s11, %s1682_s19  }
 0x93b PF: > { %s1706_s10 = sand.u32 1, %s2494_s27   ;;  %p3451_p5 = scmp.ne.s32.totalorder %s3433_s12, 0 }
 0x93c   : > { %p3452_p9 = scmp.ge.s32.totalorder %s2506_s30, 2  ;;  %s1707_s25 = scalar_lea.sflag [#allocation4], %s1706_s10 }
 0x93e   : > { %p1908_p12 = pnand %p3452_p9, %p3451_p5 }
 0x940   : > { %2489 = dma.done.wait (!%p1908_p12), %s1707_s25, 16  }
 0x941   : > { %2491 = vsyncadd (!%p1908_p12), %s1707_s25, 4294967280  ;;  %p22_p2 = scmp.ge.s32.totalorder %s2680_s20, 4   ;;  %s3453_s27 = smov %s2498_s28 }
 0x942   : > { %s3454_s28 = smov %s2502_s29  ;;  %s3455_s29 = smov %s2689_s23 }
 0x943   : > { %s3456_s30 = smov %s2680_s20  ;;  %24 = sbr.rel (!%p22_p2) target bundleno = 8 (0x8), region = 109 }
 0x94a   :  { %1711 = vsyncpa [#allocation3], 1 }
 0x94b   :  { %1713 = vsyncpa [#allocation3 + $0x1], 1 }
 0x94c   :  { %1714 = vsyncpa [#allocation6], 1 }
 0x94d   :  { %1715 = vsyncpa [#allocation4], 1 }
 0x94e   :  { %1717 = vsyncpa [#allocation4 + $0x1], 1 }

</bundles_post_ra>
